<compile_context>
chip_gen: v5e
topology: v5e:2x2
jax: 0.10.0
libtpu: 0.0.40
codegen_flags: <defaults>
</compile_context>

<pallas_src>
import functools

import numpy as np
import jax
import jax.numpy as jnp
from jax import lax
from jax.experimental import pallas as pl
from jax.experimental.pallas import tpu as pltpu


# ----------------------------- small helpers ---------------------------------------------
def _ceil_to(x, m):
    return ((x + m - 1) // m) * m


def _pad2(a, rows, cols):
    return jnp.pad(a, ((0, rows - a.shape[0]), (0, cols - a.shape[1])))


def _default_tile_h(H, W):
    # Largest divisor of H whose row tile stays near the measured sweet spot (<=1024 rows).
    # Re-derive (smaller) for v7x's 64 MiB VMEM at large hidden widths.
    best = 1
    for t in range(1, H + 1):
        if H % t == 0 and t * W <= 1024:
            best = t
    return best


def _contract(x, w_ref, k_true):
    """x: (rows, Kp) f32 activations; w_ref: (Kp, Np) weights with BN scale pre-folded.

    K / N are zero-padded to lane multiples; only the first `k_true` rows of w carry data.
    """
    if k_true <= 16:
        # Tiny contraction: VPU broadcast-FMA over the true K taps (review: MXU <5%
        # utilized at K=4..8, VPU slots are idle here).
        w = w_ref[...].astype(jnp.float32)
        acc = x[:, 0:1] * w[0:1, :]
        for k in range(1, k_true):
            acc = acc + x[:, k:k + 1] * w[k:k + 1, :]
        return acc
    w = w_ref[...]
    return jnp.dot(x.astype(w.dtype), w, preferred_element_type=jnp.float32)


# ----------------------------- the Pallas kernel ------------------------------------------
def _inverted_residual_kernel(x_ref, w1_ref, b1_ref, wc_ref, wl_ref, wr_ref,
                              wu_ref, wd_ref, b2_ref, w3_ref, b3_ref,
                              mw0_ref, mwl_ref, o_ref, *,
                              W, tile_h, n_tiles, cin, hidden, expand, identity):
    i = pl.program_id(1)
    s_out = tile_h * W
    s_slab = (tile_h + 2) * W

    # (tile_h + 2)-row halo'd slab of the zero-padded image (aligned dynamic sublane slice).
    start = pl.multiple_of(i * s_out, s_out)
    xs = x_ref[0, pl.ds(start, s_slab), :]                     # (s_slab, Cp)

    # --- expand 1x1 conv (+ folded bn1) + relu6 -------------------------------------------
    if expand:
        h = jnp.clip(_contract(xs, w1_ref, cin) + b1_ref[...], 0.0, 6.0)
    else:
        h = xs                                                 # hidden == cin here

    # --- fused depthwise (1,3)+(3,1) stencil (+ folded bn2_h / bn2_v) + relu6 -------------
    # Output row r of this tile lives at slab row r+1; its five taps are static shifted
    # slices of the slab (no concatenates, no channel split/concat).
    c_ = h[W:W + s_out, :]
    l_ = h[W - 1:W - 1 + s_out, :] * mw0_ref[...]              # zero where w == 0
    r_ = h[W + 1:W + 1 + s_out, :] * mwl_ref[...]              # zero where w == W-1
    u_ = h[0:s_out, :]
    d_ = h[2 * W:2 * W + s_out, :]
    # Zero the vertical neighbours that fall outside the image (first / last row tile only;
    # the H-padding rows of x go through conv1+bn1 and are NOT zero, so mask them here).
    p = lax.broadcasted_iota(jnp.int32, (s_out, 1), 0)
    u_ = jnp.where(jnp.logical_and(i == 0, p < W), 0.0, u_)
    d_ = jnp.where(jnp.logical_and(i == n_tiles - 1, p >= s_out - W), 0.0, d_)
    dd = (c_ * wc_ref[...] + l_ * wl_ref[...] + r_ * wr_ref[...]
          + u_ * wu_ref[...] + d_ * wd_ref[...])
    dd = jnp.clip(dd + b2_ref[...], 0.0, 6.0)

    # --- project 1x1 conv (+ folded bn3, no relu) + optional identity add -----------------
    out = _contract(dd, w3_ref, hidden) + b3_ref[...]
    if identity:
        out = out + x_ref[0, pl.ds(start + W, s_out), :]
    o_ref[0] = out                                             # lane-dense (Op % 128 == 0)


# ----------------------------- wrapper -----------------------------------------------------
def inverted_residual_friendly(x_nchw, params, *, expand_ratio, stride=1, eps=1e-5,
                               tile_h=None, matmul_dtype=jnp.float32):
    """x_nchw: (N, Cin, H, W) float32 (PyTorch layout).  Returns (N, oup, H, W) float32.

    `params` holds the raw module tensors: conv1_w, conv2h_w, conv2v_w, conv3_w and BN
    tuples bn1 / bn2h / bn2v / bn3 = (gamma, beta, running_mean, running_var).
    Set matmul_dtype=jnp.bfloat16 for 2x MXU throughput at production channel counts
    (re-validate numerical tolerance in that case).
    """
    if stride != 1:
        # TODO(synk): stride=2 path (strided depthwise conv -> spatial subsampling).
        raise NotImplementedError("stride=2 path not implemented")

    N, inp, H, W = x_nchw.shape
    half = params['conv2h_w'].shape[0]
    hidden = int(round(inp * expand_ratio))
    assert hidden % 2 == 0 and hidden == 2 * half, (
        "hidden dim must be even and equal 2 * conv2_h channels")
    oup = params['conv3_w'].shape[0]
    identity = (stride == 1 and inp == oup)

    if tile_h is None:
        tile_h = _default_tile_h(H, W)
    assert H % tile_h == 0, "tile_h must divide H"
    s_out = tile_h * W
    assert s_out % 8 == 0, "tile_h * W must be a multiple of 8 (sublane tiling)"
    n_tiles = H // tile_h

    lane = 128
    cp = _ceil_to(inp, lane)
    hp = _ceil_to(hidden, lane)
    op = _ceil_to(oup, lane)
    f32 = jnp.float32

    def fold(bn):
        g, b, m, v = bn
        s = g / jnp.sqrt(v + eps)
        return s, b - m * s

    # ---- expand 1x1 conv + bn1 (scale folded into weights) -------------------------------
    if expand_ratio != 1:
        s1, c1 = fold(params['bn1'])
        w1 = params['conv1_w'][:, :, 0, 0] * s1[:, None]               # (hidden, inp)
        w1f = _pad2(w1.T.astype(f32), cp, hp).astype(matmul_dtype)
        b1 = _pad2(c1.reshape(1, hidden).astype(f32), 1, hp)
    else:
        w1f = jnp.zeros((cp, hp), matmul_dtype)                        # unused
        b1 = jnp.zeros((1, hp), f32)

    # ---- fused depthwise (1,3)+(3,1) taps over the full hidden width + bn2_h/bn2_v -------
    s2h, c2h = fold(params['bn2h'])
    s2v, c2v = fold(params['bn2v'])
    wh = params['conv2h_w'][:, 0, 0, :]                                # (half, 3)
    wv = params['conv2v_w'][:, 0, :, 0]                                # (half, 3)
    zh = jnp.zeros((half,), f32)
    s2 = jnp.concatenate([s2h, s2v])
    taps = dict(
        wc=jnp.concatenate([wh[:, 1], wv[:, 1]]) * s2,                 # centre tap
        wl=jnp.concatenate([wh[:, 0], zh]) * s2,                       # in[w-1]
        wr=jnp.concatenate([wh[:, 2], zh]) * s2,                       # in[w+1]
        wu=jnp.concatenate([zh, wv[:, 0]]) * s2,                       # in[h-1]
        wd=jnp.concatenate([zh, wv[:, 2]]) * s2,                       # in[h+1]
    )
    taps = {k: _pad2(v.reshape(1, hidden).astype(f32), 1, hp) for k, v in taps.items()}
    b2 = _pad2(jnp.concatenate([c2h, c2v]).reshape(1, hidden).astype(f32), 1, hp)

    # ---- project 1x1 conv + bn3 (scale folded, no relu) ----------------------------------
    s3, c3 = fold(params['bn3'])
    w3 = params['conv3_w'][:, :, 0, 0] * s3[:, None]                   # (oup, hidden)
    w3f = _pad2(w3.T.astype(f32), hp, op).astype(matmul_dtype)
    b3 = _pad2(c3.reshape(1, oup).astype(f32), 1, op)

    # ---- host-built {0,1} column-validity masks for the (1,3) conv -----------------------
    col = np.arange(s_out) % W
    mw0 = jnp.asarray(col != 0, f32).reshape(s_out, 1)                 # left neighbour exists
    mwl = jnp.asarray(col != W - 1, f32).reshape(s_out, 1)             # right neighbour exists

    # ---- input: NCHW -> NHWC, pad 1 row top/bottom + channels -> flatten spatial ---------
    x_nhwc = jnp.transpose(x_nchw, (0, 2, 3, 1)).astype(f32)
    x_pad = jnp.pad(x_nhwc, ((0, 0), (1, 1), (0, 0), (0, cp - inp)))
    x_flat = x_pad.reshape(N, (H + 2) * W, cp)

    kernel = functools.partial(
        _inverted_residual_kernel,
        W=W, tile_h=tile_h, n_tiles=n_tiles,
        cin=inp, hidden=hidden,
        expand=(expand_ratio != 1), identity=identity)

    operands = (x_flat, w1f, b1, taps['wc'], taps['wl'], taps['wr'], taps['wu'],
                taps['wd'], b2, w3f, b3, mw0, mwl)
    const = lambda a: pl.BlockSpec(a.shape, lambda n, i: (0, 0))       # constant-index blocks
    in_specs = [pl.BlockSpec((1, (H + 2) * W, cp), lambda n, i: (n, 0, 0))]
    in_specs += [const(a) for a in operands[1:]]

    out_flat = pl.pallas_call(
        kernel,
        out_shape=jax.ShapeDtypeStruct((N, H * W, op), f32),
        grid_spec=pltpu.PrefetchScalarGridSpec(
            num_scalar_prefetch=0,
            grid=(N, n_tiles),
            in_specs=in_specs,
            out_specs=pl.BlockSpec((1, s_out, op), lambda n, i: (n, i, 0))),
        compiler_params=pltpu.CompilerParams(
            # batch and row-tile iterations are independent -> shard across TensorCores
            dimension_semantics=("parallel", "parallel"),
            # explicit scoped-VMEM budget; shrink tile_h on v7x (64 MiB physical VMEM)
            vmem_limit_bytes=32 * 1024 * 1024),
    )(*operands)

    out = out_flat[:, :, :oup].reshape(N, H, W, oup)
    return jnp.transpose(out, (0, 3, 1, 2))


# ------------------------ pure-JAX reference (NCHW, mirrors PyTorch) -----------------------
def reference_nchw(x, p, expand_ratio, identity, eps=1e-5):
    dn = ('NCHW', 'OIHW', 'NCHW')

    def bn(y, stats):
        g, b, m, v = stats
        return ((y - m[None, :, None, None]) / jnp.sqrt(v + eps)[None, :, None, None]
                * g[None, :, None, None] + b[None, :, None, None])

    out = x
    if expand_ratio != 1:
        out = lax.conv_general_dilated(x, p['conv1_w'], (1, 1), [(0, 0), (0, 0)],
                                       dimension_numbers=dn)
        out = jnp.clip(bn(out, p['bn1']), 0.0, 6.0)
    half = out.shape[1] // 2
    o1, o2 = out[:, :half], out[:, half:]
    o1 = lax.conv_general_dilated(o1, p['conv2h_w'], (1, 1), [(0, 0), (1, 1)],
                                  dimension_numbers=dn, feature_group_count=half)
    o1 = jnp.clip(bn(o1, p['bn2h']), 0.0, 6.0)
    o2 = lax.conv_general_dilated(o2, p['conv2v_w'], (1, 1), [(1, 1), (0, 0)],
                                  dimension_numbers=dn, feature_group_count=half)
    o2 = jnp.clip(bn(o2, p['bn2v']), 0.0, 6.0)
    out = jnp.concatenate([o1, o2], axis=1)
    out = lax.conv_general_dilated(out, p['conv3_w'], (1, 1), [(0, 0), (0, 0)],
                                   dimension_numbers=dn)
    out = bn(out, p['bn3'])
    if identity:
        out = out + x
    return out


if __name__ == "__main__":
    inp, oup, stride, expand_ratio = 4, 4, 1, 2
    hidden = round(inp * expand_ratio)
    half = hidden // 2
    eps = 1e-5

    key = jax.random.PRNGKey(0)
    keys = jax.random.split(key, 9)

    conv1_w = jax.random.normal(keys[0], (hidden, inp, 1, 1), jnp.float32) * 0.2
    conv2h_w = jax.random.normal(keys[1], (half, 1, 1, 3), jnp.float32) * 0.2
    conv2v_w = jax.random.normal(keys[2], (half, 1, 3, 1), jnp.float32) * 0.2
    conv3_w = jax.random.normal(keys[3], (oup, hidden, 1, 1), jnp.float32) * 0.2

    def bn_stats(k, c):
        k1, k2, k3, k4 = jax.random.split(k, 4)
        gamma = 1.0 + 0.1 * jax.random.normal(k1, (c,), jnp.float32)
        beta = 0.1 * jax.random.normal(k2, (c,), jnp.float32)
        mean = 0.1 * jax.random.normal(k3, (c,), jnp.float32)
        var = jnp.abs(jax.random.normal(k4, (c,), jnp.float32)) + 0.5
        return gamma, beta, mean, var

    params = dict(
        conv1_w=conv1_w, bn1=bn_stats(keys[4], hidden),
        conv2h_w=conv2h_w, bn2h=bn_stats(keys[5], half),
        conv2v_w=conv2v_w, bn2v=bn_stats(keys[6], half),
        conv3_w=conv3_w, bn3=bn_stats(keys[7], oup),
    )

    # PyTorch NCHW input; tile_h=8 -> 2 row tiles per image so the halo path is exercised.
    x = jax.random.normal(keys[8], (2, inp, 16, 16), jnp.float32)

    out = inverted_residual_friendly(x, params, expand_ratio=expand_ratio,
                                     stride=stride, eps=eps, tile_h=8)
    out = jax.block_until_ready(out)

    identity = (stride == 1 and inp == oup)
    ref = jax.block_until_ready(
        reference_nchw(x, params, expand_ratio, identity, eps=eps))

    if not jnp.allclose(out, ref, atol=2e-3, rtol=2e-3):
        raise AssertionError(
            f"mismatch: max abs err {float(jnp.max(jnp.abs(out - ref)))}")
    print("KERNEL_OK")
</pallas_src>

<mosaic_0001>
module attributes {stable_mosaic.version = 11 : i64} {
  func.func @_inverted_residual_kernel(%arg0: i32, %arg1: i32, %arg2: memref<1x288x128xf32, #tpu.memory_space<vmem>>, %arg3: memref<128x128xf32, #tpu.memory_space<vmem>>, %arg4: memref<1x128xf32, #tpu.memory_space<vmem>>, %arg5: memref<1x128xf32, #tpu.memory_space<vmem>>, %arg6: memref<1x128xf32, #tpu.memory_space<vmem>>, %arg7: memref<1x128xf32, #tpu.memory_space<vmem>>, %arg8: memref<1x128xf32, #tpu.memory_space<vmem>>, %arg9: memref<1x128xf32, #tpu.memory_space<vmem>>, %arg10: memref<1x128xf32, #tpu.memory_space<vmem>>, %arg11: memref<128x128xf32, #tpu.memory_space<vmem>>, %arg12: memref<1x128xf32, #tpu.memory_space<vmem>>, %arg13: memref<128x1xf32, #tpu.memory_space<vmem>>, %arg14: memref<128x1xf32, #tpu.memory_space<vmem>>, %arg15: memref<1x128x128xf32, #tpu.memory_space<vmem>>) attributes {dimension_semantics = [#tpu.dimension_semantics<parallel>, #tpu.dimension_semantics<parallel>], iteration_bounds = array<i64: 2, 2>, scalar_prefetch = 0 : i64, scratch_operands = 0 : i64, tpu.core_type = #tpu.core_type<tc>, window_params = [{transform_indices = @transform_0, window_bounds = array<i64: 1, 288, 128>}, {pipeline_mode = #tpu.pipeline_mode<synchronous>, transform_indices = @transform_1, window_bounds = array<i64: 128, 128>}, {pipeline_mode = #tpu.pipeline_mode<synchronous>, transform_indices = @transform_2, window_bounds = array<i64: 1, 128>}, {pipeline_mode = #tpu.pipeline_mode<synchronous>, transform_indices = @transform_3, window_bounds = array<i64: 1, 128>}, {pipeline_mode = #tpu.pipeline_mode<synchronous>, transform_indices = @transform_4, window_bounds = array<i64: 1, 128>}, {pipeline_mode = #tpu.pipeline_mode<synchronous>, transform_indices = @transform_5, window_bounds = array<i64: 1, 128>}, {pipeline_mode = #tpu.pipeline_mode<synchronous>, transform_indices = @transform_6, window_bounds = array<i64: 1, 128>}, {pipeline_mode = #tpu.pipeline_mode<synchronous>, transform_indices = @transform_7, window_bounds = array<i64: 1, 128>}, {pipeline_mode = #tpu.pipeline_mode<synchronous>, transform_indices = @transform_8, window_bounds = array<i64: 1, 128>}, {pipeline_mode = #tpu.pipeline_mode<synchronous>, transform_indices = @transform_9, window_bounds = array<i64: 128, 128>}, {pipeline_mode = #tpu.pipeline_mode<synchronous>, transform_indices = @transform_10, window_bounds = array<i64: 1, 128>}, {pipeline_mode = #tpu.pipeline_mode<synchronous>, transform_indices = @transform_11, window_bounds = array<i64: 128, 1>}, {pipeline_mode = #tpu.pipeline_mode<synchronous>, transform_indices = @transform_12, window_bounds = array<i64: 128, 1>}, {transform_indices = @transform_13, window_bounds = array<i64: 1, 128, 128>}]} {
    %c128_i32 = arith.constant 128 : i32
    %0 = arith.muli %arg1, %c128_i32 : i32
    %1 = tpu.assume_multiple %0, 128 : i32
    %c0 = arith.constant 0 : index
    %2 = arith.index_cast %1 : i32 to index
    %c0_0 = arith.constant 0 : index
    %3 = vector.load %arg2[%c0, %2, %c0_0] : memref<1x288x128xf32, #tpu.memory_space<vmem>>, vector<1x160x128xf32>
    %4 = vector.shape_cast %3 : vector<1x160x128xf32> to vector<160x128xf32>
    %c0_1 = arith.constant 0 : index
    %c0_2 = arith.constant 0 : index
    %5 = vector.load %arg3[%c0_1, %c0_2] : memref<128x128xf32, #tpu.memory_space<vmem>>, vector<128x128xf32>
    %6 = vector.extract_strided_slice %4 {offsets = [0, 0], sizes = [160, 1], strides = [1, 1]} : vector<160x128xf32> to vector<160x1xf32>
    %7 = vector.extract_strided_slice %5 {offsets = [0, 0], sizes = [1, 128], strides = [1, 1]} : vector<128x128xf32> to vector<1x128xf32>
    %8 = vector.broadcast %6 : vector<160x1xf32> to vector<160x128xf32>
    %9 = vector.broadcast %7 : vector<1x128xf32> to vector<160x128xf32>
    %10 = arith.mulf %8, %9 : vector<160x128xf32>
    %11 = vector.extract_strided_slice %4 {offsets = [0, 1], sizes = [160, 1], strides = [1, 1]} : vector<160x128xf32> to vector<160x1xf32>
    %12 = vector.extract_strided_slice %5 {offsets = [1, 0], sizes = [1, 128], strides = [1, 1]} : vector<128x128xf32> to vector<1x128xf32>
    %13 = vector.broadcast %11 : vector<160x1xf32> to vector<160x128xf32>
    %14 = vector.broadcast %12 : vector<1x128xf32> to vector<160x128xf32>
    %15 = arith.mulf %13, %14 : vector<160x128xf32>
    %16 = arith.addf %10, %15 : vector<160x128xf32>
    %17 = vector.extract_strided_slice %4 {offsets = [0, 2], sizes = [160, 1], strides = [1, 1]} : vector<160x128xf32> to vector<160x1xf32>
    %18 = vector.extract_strided_slice %5 {offsets = [2, 0], sizes = [1, 128], strides = [1, 1]} : vector<128x128xf32> to vector<1x128xf32>
    %19 = vector.broadcast %17 : vector<160x1xf32> to vector<160x128xf32>
    %20 = vector.broadcast %18 : vector<1x128xf32> to vector<160x128xf32>
    %21 = arith.mulf %19, %20 : vector<160x128xf32>
    %22 = arith.addf %16, %21 : vector<160x128xf32>
    %23 = vector.extract_strided_slice %4 {offsets = [0, 3], sizes = [160, 1], strides = [1, 1]} : vector<160x128xf32> to vector<160x1xf32>
    %24 = vector.extract_strided_slice %5 {offsets = [3, 0], sizes = [1, 128], strides = [1, 1]} : vector<128x128xf32> to vector<1x128xf32>
    %25 = vector.broadcast %23 : vector<160x1xf32> to vector<160x128xf32>
    %26 = vector.broadcast %24 : vector<1x128xf32> to vector<160x128xf32>
    %27 = arith.mulf %25, %26 : vector<160x128xf32>
    %28 = arith.addf %22, %27 : vector<160x128xf32>
    %c0_3 = arith.constant 0 : index
    %c0_4 = arith.constant 0 : index
    %29 = vector.load %arg4[%c0_3, %c0_4] : memref<1x128xf32, #tpu.memory_space<vmem>>, vector<1x128xf32>
    %30 = vector.broadcast %29 : vector<1x128xf32> to vector<160x128xf32>
    %31 = arith.addf %28, %30 : vector<160x128xf32>
    %cst = arith.constant 0.000000e+00 : f32
    %cst_5 = arith.constant 6.000000e+00 : f32
    %32 = vector.broadcast %cst : f32 to vector<160x128xf32>
    %33 = arith.maximumf %32, %31 : vector<160x128xf32>
    %34 = vector.broadcast %cst_5 : f32 to vector<160x128xf32>
    %35 = arith.minimumf %34, %33 : vector<160x128xf32>
    %36 = vector.extract_strided_slice %35 {offsets = [16, 0], sizes = [128, 128], strides = [1, 1]} : vector<160x128xf32> to vector<128x128xf32>
    %37 = vector.extract_strided_slice %35 {offsets = [15, 0], sizes = [128, 128], strides = [1, 1]} : vector<160x128xf32> to vector<128x128xf32>
    %c0_6 = arith.constant 0 : index
    %c0_7 = arith.constant 0 : index
    %38 = vector.load %arg13[%c0_6, %c0_7] : memref<128x1xf32, #tpu.memory_space<vmem>>, vector<128x1xf32>
    %39 = vector.broadcast %38 : vector<128x1xf32> to vector<128x128xf32>
    %40 = arith.mulf %37, %39 : vector<128x128xf32>
    %41 = vector.extract_strided_slice %35 {offsets = [17, 0], sizes = [128, 128], strides = [1, 1]} : vector<160x128xf32> to vector<128x128xf32>
    %c0_8 = arith.constant 0 : index
    %c0_9 = arith.constant 0 : index
    %42 = vector.load %arg14[%c0_8, %c0_9] : memref<128x1xf32, #tpu.memory_space<vmem>>, vector<128x1xf32>
    %43 = vector.broadcast %42 : vector<128x1xf32> to vector<128x128xf32>
    %44 = arith.mulf %41, %43 : vector<128x128xf32>
    %45 = vector.extract_strided_slice %35 {offsets = [0, 0], sizes = [128, 128], strides = [1, 1]} : vector<160x128xf32> to vector<128x128xf32>
    %46 = vector.extract_strided_slice %35 {offsets = [32, 0], sizes = [128, 128], strides = [1, 1]} : vector<160x128xf32> to vector<128x128xf32>
    %47 = tpu.iota {dimensions = array<i32: 0>} : vector<128x1xi32>
    %c0_i32 = arith.constant 0 : i32
    %48 = arith.cmpi eq, %arg1, %c0_i32 : i32
    %c16_i32 = arith.constant 16 : i32
    %49 = vector.broadcast %c16_i32 : i32 to vector<128x1xi32>
    %50 = arith.cmpi slt, %47, %49 : vector<128x1xi32>
    %51 = vector.broadcast %48 : i1 to vector<128x1xi1>
    %52 = arith.andi %51, %50 : vector<128x1xi1>
    %cst_10 = arith.constant 0.000000e+00 : f32
    %53 = vector.shape_cast %52 : vector<128x1xi1> to vector<128x1xi1>
    %54 = vector.broadcast %53 : vector<128x1xi1> to vector<128x128xi1>
    %55 = vector.broadcast %cst_10 : f32 to vector<128x128xf32>
    %56 = arith.select %54, %55, %45 : vector<128x128xi1>, vector<128x128xf32>
    %c1_i32 = arith.constant 1 : i32
    %57 = arith.cmpi eq, %arg1, %c1_i32 : i32
    %c112_i32 = arith.constant 112 : i32
    %58 = vector.broadcast %c112_i32 : i32 to vector<128x1xi32>
    %59 = arith.cmpi sge, %47, %58 : vector<128x1xi32>
    %60 = vector.broadcast %57 : i1 to vector<128x1xi1>
    %61 = arith.andi %60, %59 : vector<128x1xi1>
    %cst_11 = arith.constant 0.000000e+00 : f32
    %62 = vector.shape_cast %61 : vector<128x1xi1> to vector<128x1xi1>
    %63 = vector.broadcast %62 : vector<128x1xi1> to vector<128x128xi1>
    %64 = vector.broadcast %cst_11 : f32 to vector<128x128xf32>
    %65 = arith.select %63, %64, %46 : vector<128x128xi1>, vector<128x128xf32>
    %c0_12 = arith.constant 0 : index
    %c0_13 = arith.constant 0 : index
    %66 = vector.load %arg5[%c0_12, %c0_13] : memref<1x128xf32, #tpu.memory_space<vmem>>, vector<1x128xf32>
    %67 = vector.broadcast %66 : vector<1x128xf32> to vector<128x128xf32>
    %68 = arith.mulf %36, %67 : vector<128x128xf32>
    %c0_14 = arith.constant 0 : index
    %c0_15 = arith.constant 0 : index
    %69 = vector.load %arg6[%c0_14, %c0_15] : memref<1x128xf32, #tpu.memory_space<vmem>>, vector<1x128xf32>
    %70 = vector.broadcast %69 : vector<1x128xf32> to vector<128x128xf32>
    %71 = arith.mulf %40, %70 : vector<128x128xf32>
    %72 = arith.addf %68, %71 : vector<128x128xf32>
    %c0_16 = arith.constant 0 : index
    %c0_17 = arith.constant 0 : index
    %73 = vector.load %arg7[%c0_16, %c0_17] : memref<1x128xf32, #tpu.memory_space<vmem>>, vector<1x128xf32>
    %74 = vector.broadcast %73 : vector<1x128xf32> to vector<128x128xf32>
    %75 = arith.mulf %44, %74 : vector<128x128xf32>
    %76 = arith.addf %72, %75 : vector<128x128xf32>
    %c0_18 = arith.constant 0 : index
    %c0_19 = arith.constant 0 : index
    %77 = vector.load %arg8[%c0_18, %c0_19] : memref<1x128xf32, #tpu.memory_space<vmem>>, vector<1x128xf32>
    %78 = vector.broadcast %77 : vector<1x128xf32> to vector<128x128xf32>
    %79 = arith.mulf %56, %78 : vector<128x128xf32>
    %80 = arith.addf %76, %79 : vector<128x128xf32>
    %c0_20 = arith.constant 0 : index
    %c0_21 = arith.constant 0 : index
    %81 = vector.load %arg9[%c0_20, %c0_21] : memref<1x128xf32, #tpu.memory_space<vmem>>, vector<1x128xf32>
    %82 = vector.broadcast %81 : vector<1x128xf32> to vector<128x128xf32>
    %83 = arith.mulf %65, %82 : vector<128x128xf32>
    %84 = arith.addf %80, %83 : vector<128x128xf32>
    %c0_22 = arith.constant 0 : index
    %c0_23 = arith.constant 0 : index
    %85 = vector.load %arg10[%c0_22, %c0_23] : memref<1x128xf32, #tpu.memory_space<vmem>>, vector<1x128xf32>
    %86 = vector.broadcast %85 : vector<1x128xf32> to vector<128x128xf32>
    %87 = arith.addf %84, %86 : vector<128x128xf32>
    %cst_24 = arith.constant 0.000000e+00 : f32
    %cst_25 = arith.constant 6.000000e+00 : f32
    %88 = vector.broadcast %cst_24 : f32 to vector<128x128xf32>
    %89 = arith.maximumf %88, %87 : vector<128x128xf32>
    %90 = vector.broadcast %cst_25 : f32 to vector<128x128xf32>
    %91 = arith.minimumf %90, %89 : vector<128x128xf32>
    %c0_26 = arith.constant 0 : index
    %c0_27 = arith.constant 0 : index
    %92 = vector.load %arg11[%c0_26, %c0_27] : memref<128x128xf32, #tpu.memory_space<vmem>>, vector<128x128xf32>
    %93 = vector.extract_strided_slice %91 {offsets = [0, 0], sizes = [128, 1], strides = [1, 1]} : vector<128x128xf32> to vector<128x1xf32>
    %94 = vector.extract_strided_slice %92 {offsets = [0, 0], sizes = [1, 128], strides = [1, 1]} : vector<128x128xf32> to vector<1x128xf32>
    %95 = vector.broadcast %93 : vector<128x1xf32> to vector<128x128xf32>
    %96 = vector.broadcast %94 : vector<1x128xf32> to vector<128x128xf32>
    %97 = arith.mulf %95, %96 : vector<128x128xf32>
    %98 = vector.extract_strided_slice %91 {offsets = [0, 1], sizes = [128, 1], strides = [1, 1]} : vector<128x128xf32> to vector<128x1xf32>
    %99 = vector.extract_strided_slice %92 {offsets = [1, 0], sizes = [1, 128], strides = [1, 1]} : vector<128x128xf32> to vector<1x128xf32>
    %100 = vector.broadcast %98 : vector<128x1xf32> to vector<128x128xf32>
    %101 = vector.broadcast %99 : vector<1x128xf32> to vector<128x128xf32>
    %102 = arith.mulf %100, %101 : vector<128x128xf32>
    %103 = arith.addf %97, %102 : vector<128x128xf32>
    %104 = vector.extract_strided_slice %91 {offsets = [0, 2], sizes = [128, 1], strides = [1, 1]} : vector<128x128xf32> to vector<128x1xf32>
    %105 = vector.extract_strided_slice %92 {offsets = [2, 0], sizes = [1, 128], strides = [1, 1]} : vector<128x128xf32> to vector<1x128xf32>
    %106 = vector.broadcast %104 : vector<128x1xf32> to vector<128x128xf32>
    %107 = vector.broadcast %105 : vector<1x128xf32> to vector<128x128xf32>
    %108 = arith.mulf %106, %107 : vector<128x128xf32>
    %109 = arith.addf %103, %108 : vector<128x128xf32>
    %110 = vector.extract_strided_slice %91 {offsets = [0, 3], sizes = [128, 1], strides = [1, 1]} : vector<128x128xf32> to vector<128x1xf32>
    %111 = vector.extract_strided_slice %92 {offsets = [3, 0], sizes = [1, 128], strides = [1, 1]} : vector<128x128xf32> to vector<1x128xf32>
    %112 = vector.broadcast %110 : vector<128x1xf32> to vector<128x128xf32>
    %113 = vector.broadcast %111 : vector<1x128xf32> to vector<128x128xf32>
    %114 = arith.mulf %112, %113 : vector<128x128xf32>
    %115 = arith.addf %109, %114 : vector<128x128xf32>
    %116 = vector.extract_strided_slice %91 {offsets = [0, 4], sizes = [128, 1], strides = [1, 1]} : vector<128x128xf32> to vector<128x1xf32>
    %117 = vector.extract_strided_slice %92 {offsets = [4, 0], sizes = [1, 128], strides = [1, 1]} : vector<128x128xf32> to vector<1x128xf32>
    %118 = vector.broadcast %116 : vector<128x1xf32> to vector<128x128xf32>
    %119 = vector.broadcast %117 : vector<1x128xf32> to vector<128x128xf32>
    %120 = arith.mulf %118, %119 : vector<128x128xf32>
    %121 = arith.addf %115, %120 : vector<128x128xf32>
    %122 = vector.extract_strided_slice %91 {offsets = [0, 5], sizes = [128, 1], strides = [1, 1]} : vector<128x128xf32> to vector<128x1xf32>
    %123 = vector.extract_strided_slice %92 {offsets = [5, 0], sizes = [1, 128], strides = [1, 1]} : vector<128x128xf32> to vector<1x128xf32>
    %124 = vector.broadcast %122 : vector<128x1xf32> to vector<128x128xf32>
    %125 = vector.broadcast %123 : vector<1x128xf32> to vector<128x128xf32>
    %126 = arith.mulf %124, %125 : vector<128x128xf32>
    %127 = arith.addf %121, %126 : vector<128x128xf32>
    %128 = vector.extract_strided_slice %91 {offsets = [0, 6], sizes = [128, 1], strides = [1, 1]} : vector<128x128xf32> to vector<128x1xf32>
    %129 = vector.extract_strided_slice %92 {offsets = [6, 0], sizes = [1, 128], strides = [1, 1]} : vector<128x128xf32> to vector<1x128xf32>
    %130 = vector.broadcast %128 : vector<128x1xf32> to vector<128x128xf32>
    %131 = vector.broadcast %129 : vector<1x128xf32> to vector<128x128xf32>
    %132 = arith.mulf %130, %131 : vector<128x128xf32>
    %133 = arith.addf %127, %132 : vector<128x128xf32>
    %134 = vector.extract_strided_slice %91 {offsets = [0, 7], sizes = [128, 1], strides = [1, 1]} : vector<128x128xf32> to vector<128x1xf32>
    %135 = vector.extract_strided_slice %92 {offsets = [7, 0], sizes = [1, 128], strides = [1, 1]} : vector<128x128xf32> to vector<1x128xf32>
    %136 = vector.broadcast %134 : vector<128x1xf32> to vector<128x128xf32>
    %137 = vector.broadcast %135 : vector<1x128xf32> to vector<128x128xf32>
    %138 = arith.mulf %136, %137 : vector<128x128xf32>
    %139 = arith.addf %133, %138 : vector<128x128xf32>
    %c0_28 = arith.constant 0 : index
    %c0_29 = arith.constant 0 : index
    %140 = vector.load %arg12[%c0_28, %c0_29] : memref<1x128xf32, #tpu.memory_space<vmem>>, vector<1x128xf32>
    %141 = vector.broadcast %140 : vector<1x128xf32> to vector<128x128xf32>
    %142 = arith.addf %139, %141 : vector<128x128xf32>
    %c16_i32_30 = arith.constant 16 : i32
    %143 = arith.addi %1, %c16_i32_30 : i32
    %c0_31 = arith.constant 0 : index
    %144 = arith.index_cast %143 : i32 to index
    %c0_32 = arith.constant 0 : index
    %145 = vector.load %arg2[%c0_31, %144, %c0_32] : memref<1x288x128xf32, #tpu.memory_space<vmem>>, vector<1x128x128xf32>
    %146 = vector.shape_cast %145 : vector<1x128x128xf32> to vector<128x128xf32>
    %147 = arith.addf %142, %146 : vector<128x128xf32>
    %c0_33 = arith.constant 0 : index
    %c0_34 = arith.constant 0 : index
    %c0_35 = arith.constant 0 : index
    %148 = vector.load %arg15[%c0_33, %c0_34, %c0_35] : memref<1x128x128xf32, #tpu.memory_space<vmem>>, vector<1x128x128xf32>
    %149 = vector.shape_cast %148 : vector<1x128x128xf32> to vector<128x128xf32>
    %150 = vector.shape_cast %147 : vector<128x128xf32> to vector<1x128x128xf32>
    tpu.vector_store %arg15[%c0_33, %c0_34, %c0_35], %150 {strides = array<i32>} : memref<1x128x128xf32, #tpu.memory_space<vmem>>, vector<1x128x128xf32>,
    return
  }
  func.func @transform_0(%arg0: i32, %arg1: i32) -> (i32, i32, i32) {
    %c0_i32 = arith.constant 0 : i32
    %c0_i32_0 = arith.constant 0 : i32
    %c0_i32_1 = arith.constant 0 : i32
    return %arg0, %c0_i32, %c0_i32_0 : i32, i32, i32
  }
  func.func @transform_1(%arg0: i32, %arg1: i32) -> (i32, i32) {
    %c0_i32 = arith.constant 0 : i32
    %c0_i32_0 = arith.constant 0 : i32
    %c0_i32_1 = arith.constant 0 : i32
    return %c0_i32, %c0_i32_0 : i32, i32
  }
  func.func @transform_2(%arg0: i32, %arg1: i32) -> (i32, i32) {
    %c0_i32 = arith.constant 0 : i32
    %c0_i32_0 = arith.constant 0 : i32
    %c0_i32_1 = arith.constant 0 : i32
    return %c0_i32, %c0_i32_0 : i32, i32
  }
  func.func @transform_3(%arg0: i32, %arg1: i32) -> (i32, i32) {
    %c0_i32 = arith.constant 0 : i32
    %c0_i32_0 = arith.constant 0 : i32
    %c0_i32_1 = arith.constant 0 : i32
    return %c0_i32, %c0_i32_0 : i32, i32
  }
  func.func @transform_4(%arg0: i32, %arg1: i32) -> (i32, i32) {
    %c0_i32 = arith.constant 0 : i32
    %c0_i32_0 = arith.constant 0 : i32
    %c0_i32_1 = arith.constant 0 : i32
    return %c0_i32, %c0_i32_0 : i32, i32
  }
  func.func @transform_5(%arg0: i32, %arg1: i32) -> (i32, i32) {
    %c0_i32 = arith.constant 0 : i32
    %c0_i32_0 = arith.constant 0 : i32
    %c0_i32_1 = arith.constant 0 : i32
    return %c0_i32, %c0_i32_0 : i32, i32
  }
  func.func @transform_6(%arg0: i32, %arg1: i32) -> (i32, i32) {
    %c0_i32 = arith.constant 0 : i32
    %c0_i32_0 = arith.constant 0 : i32
    %c0_i32_1 = arith.constant 0 : i32
    return %c0_i32, %c0_i32_0 : i32, i32
  }
  func.func @transform_7(%arg0: i32, %arg1: i32) -> (i32, i32) {
    %c0_i32 = arith.constant 0 : i32
    %c0_i32_0 = arith.constant 0 : i32
    %c0_i32_1 = arith.constant 0 : i32
    return %c0_i32, %c0_i32_0 : i32, i32
  }
  func.func @transform_8(%arg0: i32, %arg1: i32) -> (i32, i32) {
    %c0_i32 = arith.constant 0 : i32
    %c0_i32_0 = arith.constant 0 : i32
    %c0_i32_1 = arith.constant 0 : i32
    return %c0_i32, %c0_i32_0 : i32, i32
  }
  func.func @transform_9(%arg0: i32, %arg1: i32) -> (i32, i32) {
    %c0_i32 = arith.constant 0 : i32
    %c0_i32_0 = arith.constant 0 : i32
    %c0_i32_1 = arith.constant 0 : i32
    return %c0_i32, %c0_i32_0 : i32, i32
  }
  func.func @transform_10(%arg0: i32, %arg1: i32) -> (i32, i32) {
    %c0_i32 = arith.constant 0 : i32
    %c0_i32_0 = arith.constant 0 : i32
    %c0_i32_1 = arith.constant 0 : i32
    return %c0_i32, %c0_i32_0 : i32, i32
  }
  func.func @transform_11(%arg0: i32, %arg1: i32) -> (i32, i32) {
    %c0_i32 = arith.constant 0 : i32
    %c0_i32_0 = arith.constant 0 : i32
    %c0_i32_1 = arith.constant 0 : i32
    return %c0_i32, %c0_i32_0 : i32, i32
  }
  func.func @transform_12(%arg0: i32, %arg1: i32) -> (i32, i32) {
    %c0_i32 = arith.constant 0 : i32
    %c0_i32_0 = arith.constant 0 : i32
    %c0_i32_1 = arith.constant 0 : i32
    return %c0_i32, %c0_i32_0 : i32, i32
  }
  func.func @transform_13(%arg0: i32, %arg1: i32) -> (i32, i32, i32) {
    %c0_i32 = arith.constant 0 : i32
    %c0_i32_0 = arith.constant 0 : i32
    return %arg0, %arg1, %c0_i32 : i32, i32, i32
  }
}

</mosaic_0001>

<bundles_post_ra>
// kernel: tpu_custom_call.1
= control target key start
LH: loop header
LB: loop body
LE: loop exit
PB: predicated region body
PF: predicated region fallthrough
CT: control target
= control target key end

     0   :  { %s5534_s0 = inlined_call_operand.hbm [shape: f32[2,288,128], index: 0, kind: input, shape index: {}]   ;;  %s5535_s1 = inlined_call_operand.vmem [shape: f32[128,128], index: 1, kind: input, shape index: {}]   ;;  %s5536_s2 = inlined_call_operand.vmem [shape: f32[1,128], index: 2, kind: input, shape index: {}]   ;;  %s5537_s3 = inlined_call_operand.vmem [shape: f32[1,128], index: 3, kind: input, shape index: {}]   ;;  %s5538_s4 = inlined_call_operand.hbm [shape: f32[1,128], index: 4, kind: input, shape index: {}]   ;;  %s5539_s5 = inlined_call_operand.hbm [shape: f32[1,128], index: 5, kind: input, shape index: {}]   ;;  %s5540_s6 = inlined_call_operand.vmem [shape: f32[1,128], index: 6, kind: input, shape index: {}]   ;;  %s5541_s7 = inlined_call_operand.vmem [shape: f32[1,128], index: 7, kind: input, shape index: {}]   ;;  %s5542_s8 = inlined_call_operand.vmem [shape: f32[1,128], index: 8, kind: input, shape index: {}]   ;;  %s5543_s9 = inlined_call_operand.vmem [shape: f32[128,128], index: 9, kind: input, shape index: {}]   ;;  %s5544_s10 = inlined_call_operand.vmem [shape: f32[1,128], index: 10, kind: input, shape index: {}]   ;;  %s5545_s11 = inlined_call_operand.vmem [shape: f32[128,1], index: 11, kind: input, shape index: {}]   ;;  %s5546_s12 = inlined_call_operand.vmem [shape: f32[128,1], index: 12, kind: input, shape index: {}]   ;;  %s5547_s13 = inlined_call_operand.hbm [shape: f32[2,256,128], index: 13, kind: output, shape index: {}]  }
   0x1   :  { %5588 = sst [smem:[#allocation63_spill]] %s5537_s3 }
   0x2   :  { %5589 = sst [smem:[#allocation64_spill]] %s5538_s4 }
   0x3   :  { %5590 = sst [smem:[#allocation65_spill]] %s5539_s5 }
   0x4   :  { %5591 = sst [smem:[#allocation66_spill]] %s5540_s6 }
   0x5   :  { %5592 = sst [smem:[#allocation67_spill]] %s5541_s7 }
   0x6   :  { %5593 = sst [smem:[#allocation68_spill]] %s5542_s8 }
   0x7   :  { %5594 = sst [smem:[#allocation69_spill]] %s5543_s9 }
   0x8   :  { %5595 = sst [smem:[#allocation70_spill]] %s5544_s10 }
   0x9   :  { %5596 = sst [smem:[#allocation71_spill]] %s5547_s13 }
   0xa   :  { %18 = vsyncpa [#allocation3], 0 }
   0xb   :  { %20 = vsyncpa [#allocation3 + $0x1], 0 }
   0xc   :  { %21 = vsyncpa [#allocation6], 0 }
   0xd   :  { %22 = vsyncpa [#allocation4], 0 }
   0xe   :  { %24 = vsyncpa [#allocation4 + $0x1], 0  ;;  %s3399_s25 = smov 0   ;;  %s3401_s26 = smov 0  }
   0xf   :  { %s3403_s27 = smov 0   ;;  %s3405_s28 = smov 0  }
  0x10   :  { %s3407_s29 = smov 0   ;;  %s3409_s30 = smov 0  }
  0x11   :  { %s3411_s14 = smov 0   ;;  %s3413_s15 = smov 0  }
  0x12   :  { %s3415_s16 = smov 0   ;;  %s3417_s17 = smov 0  }
  0x13   :  { %s3419_s18 = smov 0  }
  0x14 LB: > { %5597 = sst [smem:[#allocation12_spill]] %s3273_s25  ;;  %s2879_s19 = sadd.s32 4294967295, %s3313_s18   ;;  %s3313_s18 = sphi %s3419_s18, %s5782_s18   ;;  %s3309_s17 = sphi %s3417_s17, %s5781_s17   ;;  %s3305_s16 = sphi %s3415_s16, %s5773_s16   ;;  %s3301_s15 = sphi %s3413_s15, %s5780_s15   ;;  %s3297_s14 = sphi %s3411_s14, %s5772_s14   ;;  %s3293_s30 = sphi %s3409_s30, %s5779_s30   ;;  %s3289_s29 = sphi %s3407_s29, %s5778_s29   ;;  %s3285_s28 = sphi %s3405_s28, %s5777_s28   ;;  %s3281_s27 = sphi %s3403_s27, %s5776_s27   ;;  %s3277_s26 = sphi %s3401_s26, %s5775_s26   ;;  %s3273_s25 = sphi %s3399_s25, %s5771_s25  }
  0x15   : > { %5598 = sst [smem:[#allocation13_spill]] %s3277_s26  ;;  %s2880_s20 = sadd.s32 4294967294, %s3313_s18  }
  0x16   : > { %5599 = sst [smem:[#allocation14_spill]] %s3301_s15  ;;  %p56_p0 = scmp.ne.s32.totalorder %s3293_s30, %s3289_s29 }
  0x17   : > { %5600 = sst [smem:[#allocation15_spill]] %s3305_s16  ;;  %p57_p1 = scmp.eq.s32.totalorder %s3313_s18, 0 }
  0x18   : > { %5601 = sst [smem:[#allocation16_spill]] %s3313_s18  ;;  %p62_p2 = scmp.ne.s32.totalorder %s3289_s29, %s3285_s28 }
  0x19   : > { %p3459_p3 = scmp.eq.s32.totalorder %s2879_s19, 0  ;;  %p3464_p4 = por %p57_p1, %p56_p0 }
  0x1a   : > { %p339_p5 = scmp.ne.s32.totalorder %s3281_s27, %s3277_s26  ;;  %p340_p7 = scmp.eq.s32.totalorder %s2879_s19, 3 }
  0x1b   : > { %p3472_p6 = por %p3459_p3, %p62_p2  ;;  %p345_p8 = scmp.ne.s32.totalorder %s3277_s26, %s3273_s25 }
  0x1c   : > { %p346_p9 = scmp.eq.s32.totalorder %s2880_s20, 3  ;;  %p3478_p10 = por %p340_p7, %p339_p5 }
  0x1d   : > { %p2881_p11 = scmp.ge.s32.totalorder %s3313_s18, 1  ;;  %p353_p13 = scmp.lt.s32.totalorder %s3313_s18, 5 }
  0x1e   : > { %s5605_s28 = scalar_select %p3478_p10, 1, 0 }
  0x1f   : > { %p3483_p12 = por %p346_p9, %p345_p8  ;;  %s5609_s4 = sld [smem:[#allocation64_spill]] }
  0x20   : > { %5606 = sst [smem:[#allocation17_spill]] %s5605_s28  ;;  %p3491_p0 = pnand %p2881_p11, %p353_p13 }
  0x21   : > { %s5607_s23 = scalar_select %p3483_p12, 1, 0 }
  0x22   : > { %p2929_p1 = pneg %p3491_p0  ;;  %s3315_s19 = smov [#allocation5]  }
  0x23   : > { %5608 = sst [smem:[#allocation18_spill]] %s5607_s23  ;;  %s376_s20 = sshll.u32 %s3315_s19, 4  ;;  %s377_s20 = int_to_ptr.vmem [resolvable:$true] %s376_s20 }
  0x24   : > { %p2946_p2 = scmp.lt.s32.totalorder %s3313_s18, 4  ;;  %p2930_p5 = pnand %p2929_p1, %p3459_p3 }
  0x25   : > { %s374_s10 = sshll.u32 %s5609_s4, 4  ;;  %s5611_s5 = sld [smem:[#allocation65_spill]]  ;;  %s375_s10 = int_to_ptr.hbm [resolvable:$true] %s374_s10 }
  0x26   : > { %p3505_p7 = pnand %p2946_p2, %p3464_p4  ;;  %s3316_s25 = smov [#allocation7]  }
  0x27   : > { %2932 = dma.hbm_to_vmem [thread:$0]  (!%p2930_p5), %s375_s10, 16, %s377_s20, [#allocation6]  }
  0x28   : > { %s388_s19 = sshll.u32 %s3316_s25, 4  ;;  %s39_s18 = sadd.s32 1, %s3305_s16  ;;  %s389_s19 = int_to_ptr.vmem [resolvable:$true] %s388_s19 }
  0x29   : > { %p40_p8 = scmp.ge.s32.totalorder %s39_s18, 2  ;;  %s42_s28 = sadd.s32 1, %s3309_s17 }
  0x2a   : > { %s420_s26 = sand.u32 1, %s3293_s30   ;;  %s2915_s8 = smul.u32 288, %s3309_s17 }
  0x2b   : > { %s386_s4 = sshll.u32 %s5611_s5, 4  ;;  %s5784_s18 = smov (%p40_p8, %s39_s18), 0  ;;  %s387_s4 = int_to_ptr.hbm [resolvable:$true] %s386_s4 }
  0x2c   : > { %2935 = dma.hbm_to_vmem [thread:$0]  (!%p2930_p5), %s387_s4, 16, %s389_s19, [#allocation6]  }
  0x2d   : > { %5613 = sst [smem:[#allocation19_spill]] %s5784_s18  ;;  %s5786_s28 = smov (!%p40_p8, %s42_s28), %s3309_s17 }
  0x2e   : > { %s325_s24 = ssub.s32 %s3305_s16, %s5784_s18  ;;  %p44_p4 = scmp.ge.s32.totalorder %s5786_s28, 2 }
  0x2f   : > { %s2914_s10 = smul.u32 288, %s420_s26  ;;  %s429_s4 = scalar_lea.hbm %s5534_s0, %s2915_s8 }
  0x30   : > { %s5788_s28 = smov (%p44_p4, %s5786_s28), 0  ;;  %s430_s15 = sshll.u32 %s429_s4, 4  ;;  %s431_s15 = int_to_ptr.hbm [resolvable:$true] %s430_s15 }
  0x31   : > { %s46_s21 = ssub.s32 %s3309_s17, %s5788_s28  ;;  %s424_s5 = scalar_lea.vmem [#allocation2], %s2914_s10 }
  0x32   : > { %p47_p9 = scmp.eq.s32.totalorder %s46_s21, 0  ;;  %s326_s19 = sor.u32 %s325_s24, %s46_s21 }
  0x33   : > { %p327_p11 = scmp.eq.s32.totalorder %s326_s19, 0  ;;  %s432_s7 = sshll.u32 %s424_s5, 4  ;;  %s433_s7 = int_to_ptr.vmem [resolvable:$true] %s432_s7 }
  0x34   : > { %s5614_s6 = sadd.s32 1, %s3293_s30  ;;  %s5615_s16 = sadd.s32 1, %s3281_s27 }
  0x35   : > { %s3528_s18 = scalar_select %p47_p9, %s3293_s30, %s5614_s6  }
  0x36   : > { %s3533_s3 = scalar_select %p327_p11, %s3281_s27, %s5615_s16  }
  0x37   : > { %s421_s8 = scalar_lea.sflag [#allocation3], %s420_s26  ;;  %s3317_s25 = smov 128  }
  0x38   : > { %s3318_s20 = smov 8   ;;  %444 = sbr.rel (%p3491_p0) target bundleno = 1117 (0x45d), region = 72 }
  0x39   : > { %2939 = dma.hbm_to_vmem [thread:$0]  (!%p3505_p7), %s431_s15, 4608, %s433_s7, %s421_s8, %s3317_s25, %s3317_s25, %s3318_s20  }
  0x3d   : > { %s446_s24 = sand.u32 1, %s3289_s29  }
  0x3e   : > { %s2916_s10 = smul.u32 288, %s446_s24  ;;  %s447_s5 = scalar_lea.sflag [#allocation3], %s446_s24 }
  0x40   : > { %s450_s4 = scalar_lea.vmem [#allocation2], %s2916_s10 }
  0x41   : > { %3260 = dma.done.wait (%p3472_p6), %s447_s5, 4608  }
  0x42   : > { %3262 = vsyncadd (%p3472_p6), %s447_s5, 4294962688 }
  0x43   : > { %3264 = dma.done.wait (%p3459_p3), [#allocation6], 32  }
  0x44   : > { %3266 = vsyncadd (%p3459_p3), [#allocation6], 4294967264  ;;  %v5563_v0 = vmov 1   ;;  %v3320_v1 = vmov 0   ;;  %s2890_s6 = sshll.u32 %s3297_s14, 7  ;;  %v5561_v19 = vmov 2  }
  0x45   : > { %3055 = vset.pattern.permute.xlu0 %v5563_v0  ;;  %3053 = vset.pattern.permute.xlu2 %v3320_v1  ;;  %s3552_s7 = scalar_lea.vmem %s450_s4, %s2890_s6 [#allocation2]  ;;  %v5559_v23 = vmov 3   ;;  %v1077_v57 = vld [vmem:[%s5545_s11 + $0x8] sm:$0xff]  ;;  %v1082_v61 = vld [vmem:[%s5545_s11 + $0x30] sm:$0xff]  ;;  %p1385_p3 = scmp.eq.s32.totalorder %s3297_s14, 0  ;;  %vm1156_vm1 = vcmask 1046528   ;;  %vm1302_vm2 = vcmask 1040384  }
  0x46   : > { %3052 = vset.pattern.permute.xlu1 %v3320_v1  ;;  %v3555_v2 = vld [vmem:[%s3552_s7 + $0x20] sm:$0xff]  ;;  %v3558_v3 = vld [vmem:[%s3552_s7 + $0x10] sm:$0xff]  ;;  %v3561_v4 = vld [vmem:[%s3552_s7 + $0x8] sm:$0xff]  ;;  %s5663_s16 = sld [smem:[#allocation63_spill]]  ;;  %p1469_p6 = scmp.eq.s32.totalorder %s3297_s14, 1 }
  0x47   : > { %550 = vperm.xlu2 %3053, %v3555_v2   ;;  %540 = vperm.xlu1 %3052, %v3558_v3   ;;  %v3567_v5 = vld [vmem:[%s3552_s7 + $0x28] sm:$0xff]  ;;  %v3570_v6 = vld [vmem:[%s3552_s7 + $0x18] sm:$0xff]  ;;  %v3573_v7 = vld [vmem:[%s3552_s7 + $0x30] sm:$0xff]  ;;  %s4070_s4 = scalar_select %p1385_p3, 1, 0 }
  0x48   : > { %654 = vperm.xlu0 %3055, %v3561_v4   ;;  %v3579_v8 = vld [vmem:[%s3552_s7 + $0x40] sm:$0xff]  ;;  %v3582_v9 = vld [vmem:[%s3552_s7 + $0x38] sm:$0xff]  ;;  %v3585_v10 = vld [vmem:[%s3552_s7 + $0x48] sm:$0xff]  ;;  %s5665_s15 = sld [smem:[#allocation66_spill]]  ;;  %s2909_s25 = sshll.u32 %s3297_s14, 4 }
  0x49   : > { %v3591_v11 = vld [vmem:[%s3552_s7 + $0x58] sm:$0xff]  ;;  %v3594_v12 = vld [vmem:[%s3552_s7 + $0x50] sm:$0xff]  ;;  %v3597_v13 = vld [vmem:[%s3552_s7 + $0x60] sm:$0xff]  ;;  %s5668_s8 = sld [smem:[#allocation67_spill]] }
  0x4a   : > { %v3603_v14 = vld [vmem:[%s3552_s7 + $0x70] sm:$0xff]  ;;  %v3606_v15 = vld [vmem:[%s3552_s7 + $0x68] sm:$0xff]  ;;  %v3609_v16 = vld [vmem:[%s3552_s7 + $0x78] sm:$0xff]  ;;  %s5711_s24 = sld [smem:[#allocation68_spill]] }
  0x4b   : > { %v3615_v17 = vld [vmem:[%s3552_s7 + $0x88] sm:$0xff]  ;;  %v3618_v18 = vld [vmem:[%s3552_s7 + $0x80] sm:$0xff]  ;;  %v3625_v20 = vld [vmem:[%s3552_s7 + $0x98] sm:$0xff]  ;;  %s1486_s6 = scalar_select %p1469_p6, 1, 0 }
  0x4c   : > { %v3628_v21 = vld [vmem:[%s3552_s7] sm:$0xff]  ;;  %v3645_v22 = vld [vmem:[%s3552_s7 + $0x90] sm:$0xff]  ;;  %s5763_s26 = sld [smem:[#allocation13_spill]] }
  0x4f   : > { %555 = vperm.xlu2 %3053, %v3567_v5   ;;  %545 = vperm.xlu1 %3052, %v3570_v6  }
  0x50   : > { %674 = vperm.xlu0 %3055, %v3573_v7  }
  0x57   : > { %570 = vperm.xlu2 %3053, %v3579_v8   ;;  %565 = vperm.xlu1 %3052, %v3582_v9  }
  0x58   : > { %686 = vperm.xlu0 %3055, %v3585_v10  }
  0x5f   : > { %585 = vperm.xlu2 %3053, %v3591_v11   ;;  %580 = vperm.xlu1 %3052, %v3594_v12  }
  0x60   : > { %698 = vperm.xlu0 %3055, %v3597_v13  }
  0x67   : > { %600 = vperm.xlu2 %3053, %v3603_v14   ;;  %595 = vperm.xlu1 %3052, %v3606_v15  }
  0x68   : > { %710 = vperm.xlu0 %3055, %v3609_v16  }
  0x6f   : > { %615 = vperm.xlu2 %3053, %v3615_v17   ;;  %610 = vperm.xlu1 %3052, %v3618_v18  }
  0x70   : > { %3058 = vset.pattern.permute.xlu0 %v5561_v19 }
  0x71   : > { %775 = vperm.xlu0 %3058, %v3561_v4  }
  0x77   : > { %3054 = vset.pattern.permute.xlu2 %v5563_v0  ;;  %625 = vperm.xlu1 %3052, %v3625_v20  }
  0x78   : > { %650 = vperm.xlu2 %3054, %v3628_v21  }
  0x79   : > { %795 = vperm.xlu0 %3058, %v3573_v7  }
  0x7f   : > { %3056 = vset.pattern.permute.xlu1 %v5563_v0  ;;  %v1236_v0 = vld [vmem:[%s5546_s12 + $0x70] sm:$0xff] }
  0x80   : > { %658 = vperm.xlu1 %3056, %v3558_v3   ;;  %662 = vperm.xlu2 %3054, %v3570_v6  }
  0x81   : > { %807 = vperm.xlu0 %3058, %v3585_v10  }
  0x88   : > { %666 = vperm.xlu1 %3056, %v3555_v2   ;;  %670 = vperm.xlu2 %3054, %v3567_v5  }
  0x89   : > { %819 = vperm.xlu0 %3058, %v3597_v13  }
  0x90   : > { %678 = vperm.xlu1 %3056, %v3582_v9   ;;  %682 = vperm.xlu2 %3054, %v3579_v8  }
  0x91   : > { %831 = vperm.xlu0 %3058, %v3609_v16  }
  0x98   : > { %690 = vperm.xlu1 %3056, %v3594_v12   ;;  %694 = vperm.xlu2 %3054, %v3591_v11  }
  0x99   : > { %843 = vperm.xlu0 %3058, %v3645_v22  }
  0xa0   : > { %702 = vperm.xlu1 %3056, %v3606_v15   ;;  %706 = vperm.xlu2 %3054, %v3603_v14  }
  0xa1   : > { %3061 = vset.pattern.permute.xlu0 %v5559_v23  ;;  %v3653_v24 = vpop.permute.xlu2 %550 }
  0xa2   : > { %896 = vperm.xlu0 %3061, %v3561_v4  }
  0xa8   : > { %714 = vperm.xlu1 %3056, %v3618_v18   ;;  %718 = vperm.xlu2 %3054, %v3615_v17  }
  0xa9   : > { %v3658_v25 = vpop.permute.xlu2 %555 }
  0xaa   : > { %916 = vperm.xlu0 %3061, %v3573_v7  }
  0xb0   : > { %726 = vperm.xlu1 %3056, %v3625_v20   ;;  %3057 = vset.pattern.permute.xlu2 %v5561_v19 }
  0xb1   : > { %v3663_v26 = vpop.permute.xlu2 %570  ;;  %771 = vperm.xlu2 %3057, %v3628_v21  }
  0xb2   : > { %928 = vperm.xlu0 %3061, %v3585_v10  }
  0xb8   : > { %3059 = vset.pattern.permute.xlu1 %v5561_v19 }
  0xb9   : > { %v3668_v27 = vpop.permute.xlu2 %585  ;;  %779 = vperm.xlu1 %3059, %v3558_v3   ;;  %v3671_v28 = vpop.permute.xlu1 %540  ;;  %783 = vperm.xlu2 %3057, %v3570_v6  }
  0xba   : > { %940 = vperm.xlu0 %3061, %v3597_v13   ;;  %v3675_v29 = vpop.permute.xlu0 %654 }
  0xc1   : > { %v3677_v30 = vpop.permute.xlu2 %600  ;;  %787 = vperm.xlu1 %3059, %v3555_v2   ;;  %v3680_v31 = vpop.permute.xlu1 %545  ;;  %791 = vperm.xlu2 %3057, %v3567_v5  }
  0xc2   : > { %952 = vperm.xlu0 %3061, %v3609_v16   ;;  %v3684_v32 = vpop.permute.xlu0 %674 }
  0xc9   : > { %v3686_v33 = vpop.permute.xlu2 %615  ;;  %799 = vperm.xlu1 %3059, %v3582_v9   ;;  %v3689_v34 = vpop.permute.xlu1 %565  ;;  %803 = vperm.xlu2 %3057, %v3579_v8  }
  0xca   : > { %964 = vperm.xlu0 %3061, %v3645_v22   ;;  %v3693_v35 = vpop.permute.xlu0 %686 }
  0xd1   : > { %811 = vperm.xlu1 %3059, %v3594_v12   ;;  %v3696_v36 = vpop.permute.xlu1 %580  ;;  %815 = vperm.xlu2 %3057, %v3591_v11  }
  0xd2   : > { %3063 = vset.pattern.permute.xlu0 %v3320_v1  ;;  %v3700_v37 = vpop.permute.xlu0 %698  ;;  %v3702_v38 = vpop.permute.xlu2 %650 }
  0xd3   : > { %530 = vperm.xlu0 %3063, %v3628_v21  }
  0xd9   : > { %823 = vperm.xlu1 %3059, %v3606_v15   ;;  %v3706_v39 = vpop.permute.xlu1 %595  ;;  %827 = vperm.xlu2 %3057, %v3603_v14  }
  0xda   : > { %v3709_v40 = vpop.permute.xlu0 %710  ;;  %v3711_v41 = vpop.permute.xlu2 %662 }
  0xdb   : > { %535 = vperm.xlu0 %3063, %v3561_v4  }
  0xe1   : > { %835 = vperm.xlu1 %3059, %v3618_v18   ;;  %v3715_v42 = vpop.permute.xlu1 %610  ;;  %839 = vperm.xlu2 %3057, %v3615_v17  }
  0xe2   : > { %v3718_v43 = vpop.permute.xlu2 %670 }
  0xe3   : > { %v3720_v44 = vpop.permute.xlu0 %775  ;;  %560 = vperm.xlu0 %3063, %v3573_v7   ;;  %v1088_v7 = vld [vmem:[%s5545_s11 + $0x60] sm:$0xff] }
  0xe9   : > { %847 = vperm.xlu1 %3059, %v3625_v20   ;;  %v3724_v45 = vpop.permute.xlu1 %625  ;;  %3060 = vset.pattern.permute.xlu2 %v5559_v23 }
  0xea   : > { %5616 = vst [vmem:[#allocation20_spill] sm:$0xff] %v3724_v45  ;;  %892 = vperm.xlu2 %3060, %v3628_v21   ;;  %v3728_v46 = vpop.permute.xlu2 %682  ;;  %v1225_v45 = vld [vmem:[%s5546_s12 + $0x18] sm:$0xff] }
  0xeb   : > { %v3730_v47 = vpop.permute.xlu0 %795  ;;  %575 = vperm.xlu0 %3063, %v3585_v10  }
  0xf1   : > { %3062 = vset.pattern.permute.xlu1 %v5559_v23  ;;  %v1089_v23 = vld [vmem:[%s5545_s11 + $0x68] sm:$0xff] }
  0xf2   : > { %900 = vperm.xlu1 %3062, %v3558_v3   ;;  %v3735_v48 = vpop.permute.xlu1 %658  ;;  %904 = vperm.xlu2 %3060, %v3570_v6   ;;  %v3738_v49 = vpop.permute.xlu2 %694  ;;  %v1085_v3 = vld [vmem:[%s5545_s11 + $0x48] sm:$0xff] }
  0xf3   : > { %v3740_v50 = vpop.permute.xlu0 %807  ;;  %590 = vperm.xlu0 %3063, %v3597_v13   ;;  %v1078_v13 = vld [vmem:[%s5545_s11 + $0x10] sm:$0xff] }
  0xfa   : > { %908 = vperm.xlu1 %3062, %v3555_v2   ;;  %v3744_v51 = vpop.permute.xlu1 %666  ;;  %912 = vperm.xlu2 %3060, %v3567_v5   ;;  %v3747_v52 = vpop.permute.xlu2 %706 }
  0xfb   : > { %v3749_v53 = vpop.permute.xlu0 %819  ;;  %605 = vperm.xlu0 %3063, %v3609_v16  }
 0x102   : > { %920 = vperm.xlu1 %3062, %v3582_v9   ;;  %v3753_v54 = vpop.permute.xlu1 %678  ;;  %924 = vperm.xlu2 %3060, %v3579_v8   ;;  %v3756_v55 = vpop.permute.xlu2 %718  ;;  %v1076_v8 = vld [vmem:[%s5545_s11] sm:$0xff] }
 0x103   : > { %v3758_v56 = vpop.permute.xlu0 %831  ;;  %620 = vperm.xlu0 %3063, %v3645_v22  }
 0x10a   : > { %932 = vperm.xlu1 %3062, %v3594_v12   ;;  %v3765_v58 = vpop.permute.xlu1 %690  ;;  %936 = vperm.xlu2 %3060, %v3591_v11   ;;  %v1091_v12 = vld [vmem:[%s5545_s11 + $0x78] sm:$0xff] }
 0x10b   : > { %v3768_v59 = vpop.permute.xlu0 %843  ;;  %1098 = vperm.xlu0 %3063, %v1077_v57   ;;  %v3770_v60 = vpop.permute.xlu2 %771 }
 0x10c   : > { %5617 = vst [vmem:[#allocation21_spill] sm:$0xff] %v3768_v59 }
 0x112   : > { %944 = vperm.xlu1 %3062, %v3606_v15   ;;  %v3776_v62 = vpop.permute.xlu1 %702  ;;  %948 = vperm.xlu2 %3060, %v3603_v14   ;;  %v1079_v14 = vld [vmem:[%s5545_s11 + $0x18] sm:$0xff] }
 0x113   : > { %1118 = vperm.xlu0 %3063, %v1082_v61   ;;  %v3779_v63 = vpop.permute.xlu2 %783  ;;  %v1227_v61 = vld [vmem:[%s5546_s12 + $0x28] sm:$0xff] }
 0x114   : > { %v3781_v2 = vpop.permute.xlu0 %896 }
 0x11a   : > { %956 = vperm.xlu1 %3062, %v3618_v18   ;;  %v3787_v4 = vpop.permute.xlu1 %714  ;;  %960 = vperm.xlu2 %3060, %v3615_v17   ;;  %v1224_v18 = vld [vmem:[%s5546_s12 + $0x10] sm:$0xff] }
 0x11b   : > { %1130 = vperm.xlu0 %3063, %v1085_v3   ;;  %v3790_v5 = vpop.permute.xlu2 %791  ;;  %v1083_v3 = vld [vmem:[%s5545_s11 + $0x38] sm:$0xff] }
 0x11c   : > { %v3792_v6 = vpop.permute.xlu0 %916 }
 0x122   : > { %968 = vperm.xlu1 %3062, %v3625_v20   ;;  %v3801_v9 = vpop.permute.xlu1 %726  ;;  %3064 = vset.pattern.permute.xlu2 %v3320_v1  ;;  %v1080_v20 = vld [vmem:[%s5545_s11 + $0x20] sm:$0xff] }
 0x123   : > { %5618 = vst [vmem:[#allocation22_spill] sm:$0xff] %v3801_v9  ;;  %1142 = vperm.xlu0 %3063, %v1088_v7   ;;  %1094 = vperm.xlu2 %3064, %v1076_v8   ;;  %v3804_v10 = vpop.permute.xlu2 %803  ;;  %v1084_v7 = vld [vmem:[%s5545_s11 + $0x40] sm:$0xff] }
 0x124   : > { %v3806_v11 = vpop.permute.xlu0 %928  ;;  %v1226_v9 = vld [vmem:[%s5546_s12 + $0x20] sm:$0xff] }
 0x12a   : > { %3065 = vset.pattern.permute.xlu1 %v3320_v1  ;;  %v1081_v1 = vld [vmem:[%s5545_s11 + $0x28] sm:$0xff] }
 0x12b   : > { %1154 = vperm.xlu0 %3063, %v1091_v12   ;;  %1102 = vperm.xlu1 %3065, %v1078_v13   ;;  %v3818_v15 = vpop.permute.xlu1 %779  ;;  %v3820_v16 = vpop.permute.xlu2 %815 }
 0x12c   : > { %v3822_v17 = vpop.permute.xlu0 %940  ;;  %1106 = vperm.xlu2 %3064, %v1079_v14   ;;  %v1230_v14 = vld [vmem:[%s5546_s12 + $0x40] sm:$0xff] }
 0x12d   : > { %5619 = vst [vmem:[#allocation23_spill] sm:$0xff] %v3822_v17 }
 0x133   : > { %1248 = vperm.xlu0 %3063, %v1224_v18   ;;  %1110 = vperm.xlu1 %3065, %v1080_v20   ;;  %v3833_v21 = vpop.permute.xlu1 %787  ;;  %v3835_v22 = vpop.permute.xlu2 %827  ;;  %v1086_v18 = vld [vmem:[%s5545_s11 + $0x50] sm:$0xff]  ;;  %v1087_v20 = vld [vmem:[%s5545_s11 + $0x58] sm:$0xff] }
 0x134   : > { %5620 = vst [vmem:[#allocation24_spill] sm:$0xff] %v3833_v21  ;;  %v3837_v57 = vpop.permute.xlu0 %952  ;;  %1114 = vperm.xlu2 %3064, %v1081_v1  }
 0x135   : > { %5621 = vst [vmem:[#allocation25_spill] sm:$0xff] %v3835_v22 }
 0x136   : > { %5622 = vst [vmem:[#allocation26_spill] sm:$0xff] %v3837_v57 }
 0x13b   : > { %1260 = vperm.xlu0 %3063, %v1227_v61   ;;  %1122 = vperm.xlu1 %3065, %v1083_v3   ;;  %v3848_v8 = vpop.permute.xlu1 %799  ;;  %v3850_v12 = vpop.permute.xlu2 %839 }
 0x13c   : > { %5623 = vst [vmem:[#allocation27_spill] sm:$0xff] %v3848_v8  ;;  %v3852_v13 = vpop.permute.xlu0 %964  ;;  %1126 = vperm.xlu2 %3064, %v1084_v7   ;;  %v1233_v7 = vld [vmem:[%s5546_s12 + $0x58] sm:$0xff] }
 0x13d   : > { %5624 = vst [vmem:[#allocation28_spill] sm:$0xff] %v3850_v12 }
 0x13e   : > { %5625 = vst [vmem:[#allocation29_spill] sm:$0xff] %v3852_v13  ;;  %v1222_v13 = vld [vmem:[%s5546_s12] sm:$0xff] }
 0x143   : > { %1272 = vperm.xlu0 %3063, %v1230_v14   ;;  %1134 = vperm.xlu1 %3065, %v1086_v18   ;;  %v3863_v1 = vpop.permute.xlu1 %811  ;;  %v1090_v14 = vld [vmem:[%s5545_s11 + $0x70] sm:$0xff] }
 0x144   : > { %5626 = vst [vmem:[#allocation30_spill] sm:$0xff] %v3863_v1  ;;  %1138 = vperm.xlu2 %3064, %v1087_v20   ;;  %v3865_v61 = vpop.permute.xlu2 %892  ;;  %v1229_v1 = vld [vmem:[%s5546_s12 + $0x38] sm:$0xff] }
 0x145   : > { %v3867_v3 = vpop.permute.xlu0 %530 }
 0x14b   : > { %1284 = vperm.xlu0 %3063, %v1233_v7   ;;  %1146 = vperm.xlu1 %3065, %v1089_v23   ;;  %v3878_v18 = vpop.permute.xlu1 %823  ;;  %v1223_v7 = vld [vmem:[%s5546_s12 + $0x8] sm:$0xff] }
 0x14c   : > { %5627 = vst [vmem:[#allocation31_spill] sm:$0xff] %v3878_v18  ;;  %1150 = vperm.xlu2 %3064, %v1090_v14   ;;  %v3880_v20 = vpop.permute.xlu2 %904 }
 0x14d   : > { %v3882_v19 = vpop.permute.xlu0 %535 }
 0x153   : > { %1296 = vperm.xlu0 %3063, %v1236_v0   ;;  %1240 = vperm.xlu1 %3065, %v1222_v13   ;;  %v3893_v23 = vpop.permute.xlu1 %835 }
 0x154   : > { %1244 = vperm.xlu2 %3064, %v1223_v7   ;;  %v3895_v14 = vpop.permute.xlu2 %912  ;;  %v1228_v7 = vld [vmem:[%s5546_s12 + $0x30] sm:$0xff] }
 0x155   : > { %v3897_v59 = vpop.permute.xlu0 %560 }
 0x15b   : > { %1252 = vperm.xlu1 %3065, %v1225_v45   ;;  %v3905_v18 = vpop.permute.xlu1 %847 }
 0x15c   : > { %5628 = vst [vmem:[#allocation32_spill] sm:$0xff] %v3905_v18  ;;  %1256 = vperm.xlu2 %3064, %v1226_v9   ;;  %v3907_v0 = vpop.permute.xlu2 %924  ;;  %v1231_v9 = vld [vmem:[%s5546_s12 + $0x48] sm:$0xff] }
 0x15d   : > { %5629 = vst [vmem:[#allocation33_spill] sm:$0xff] %v3907_v0  ;;  %v3909_v13 = vpop.permute.xlu0 %575  ;;  %v1232_v0 = vld [vmem:[%s5546_s12 + $0x50] sm:$0xff] }
 0x163   : > { %1264 = vperm.xlu1 %3065, %v1228_v7  }
 0x164   : > { %1268 = vperm.xlu2 %3064, %v1229_v1   ;;  %v3917_v57 = vpop.permute.xlu1 %900  ;;  %v3919_v45 = vpop.permute.xlu2 %936 }
 0x165   : > { %5630 = vst [vmem:[#allocation34_spill] sm:$0xff] %v3917_v57  ;;  %v3921_v18 = vpop.permute.xlu0 %590  ;;  %v1234_v57 = vld [vmem:[%s5546_s12 + $0x60] sm:$0xff] }
 0x166   : > { %5631 = vst [vmem:[#allocation35_spill] sm:$0xff] %v3919_v45  ;;  %v527_v45 = vld [vmem:[%s5535_s1] sm:$0xff] }
 0x167   : > { %5632 = vst [vmem:[#allocation36_spill] sm:$0xff] %v3921_v18  ;;  %v1235_v18 = vld [vmem:[%s5546_s12 + $0x68] sm:$0xff] }
 0x16b   : > { %1276 = vperm.xlu1 %3065, %v1231_v9   ;;  %v3944_v9 = vperm.slane %v527_v45, 0 }
 0x16c   : > { %1280 = vperm.xlu2 %3064, %v1232_v0   ;;  %v3929_v12 = vpop.permute.xlu1 %908  ;;  %v3931_v7 = vpop.permute.xlu2 %948  ;;  %v3946_v0 = vperm.slane %v527_v45, 1 }
 0x16d   : > { %5633 = vst [vmem:[#allocation37_spill] sm:$0xff] %v3929_v12  ;;  %v3933_v1 = vpop.permute.xlu0 %605  ;;  %v633_v8 = vmul.f32 %v3944_v9, %v3653_v24  ;;  %v634_v22 = vmul.f32 %v3944_v9, %v3658_v25  ;;  %v637_v21 = vmul.f32 %v3944_v9, %v3663_v26  ;;  %v632_v24 = vmul.f32 %v3944_v9, %v3680_v31  ;;  %v1237_v26 = vld [vmem:[%s5546_s12 + $0x78] sm:$0xff] }
 0x16e   : > { %5634 = vst [vmem:[#allocation38_spill] sm:$0xff] %v3931_v7  ;;  %v733_v25 = vmul.f32 %v3946_v0, %v3711_v41  ;;  %v636_v31 = vmul.f32 %v3944_v9, %v3689_v34  ;;  %v3989_v41 = vmul.f32 %v3946_v0, %v3693_v35  ;;  %v3999_v17 = vmul.f32 %v3946_v0, %v3700_v37 }
 0x16f   : > { %5635 = vst [vmem:[#allocation39_spill] sm:$0xff] %v3933_v1  ;;  %v730_v34 = vmul.f32 %v3946_v0, %v3702_v38  ;;  %v732_v35 = vmul.f32 %v3946_v0, %v3735_v48  ;;  %v741_v48 = vmul.f32 %v3946_v0, %v3738_v49  ;;  %v734_v49 = vmul.f32 %v3946_v0, %v3744_v51 }
 0x170   : > { %5636 = vst [vmem:[#allocation40_spill] sm:$0xff] %v3944_v9 }
 0x171   : > { %5637 = vst [vmem:[#allocation41_spill] sm:$0xff] %v3946_v0 }
 0x172   : > { %5642 = vst [vmem:[#allocation46_spill] sm:$0xff] %v3999_v17 }
 0x173   : > { %1288 = vperm.xlu1 %3065, %v1234_v57   ;;  %v640_v57 = vmul.f32 %v3944_v9, %v3668_v27  ;;  %v3977_v27 = vmul.f32 %v3946_v0, %v3684_v32  ;;  %v629_v32 = vmul.f32 %v3944_v9, %v3867_v3  ;;  %v753_v3 = vadd.f32 %v733_v25, %v632_v24 }
 0x174   : > { %1292 = vperm.xlu2 %3064, %v1235_v18   ;;  %v3948_v12 = vpop.permute.xlu1 %920  ;;  %v3950_v7 = vpop.permute.xlu2 %960  ;;  %v631_v18 = vmul.f32 %v3944_v9, %v3671_v28  ;;  %v646_v28 = vmul.f32 %v3944_v9, %v3686_v33  ;;  %v639_v33 = vmul.f32 %v3944_v9, %v3696_v36  ;;  %v645_v36 = vmul.f32 %v3944_v9, %v3715_v42 }
 0x175   : > { %5638 = vst [vmem:[#allocation42_spill] sm:$0xff] %v3948_v12  ;;  %v3952_v1 = vpop.permute.xlu0 %620  ;;  %v731_v12 = vmul.f32 %v3946_v0, %v3675_v29  ;;  %v3981_v29 = vperm.slane %v527_v45, 2 }
 0x176   : > { %5639 = vst [vmem:[#allocation43_spill] sm:$0xff] %v3950_v7  ;;  %v738_v7 = vmul.f32 %v3946_v0, %v3728_v46  ;;  %v4009_v46 = vmul.f32 %v3946_v0, %v3709_v40 }
 0x177   : > { %5640 = vst [vmem:[#allocation44_spill] sm:$0xff] %v3952_v1  ;;  %v643_v1 = vmul.f32 %v3944_v9, %v3677_v30  ;;  %v735_v30 = vmul.f32 %v3946_v0, %v3718_v43  ;;  %v642_v43 = vmul.f32 %v3944_v9, %v3706_v39  ;;  %v852_v38 = vmul.f32 %v3981_v29, %v3720_v44 }
 0x178   : > { %5641 = vst [vmem:[#allocation45_spill] sm:$0xff] %v3981_v29  ;;  %v630_v39 = vmul.f32 %v3944_v9, %v3882_v19  ;;  %v857_v42 = vmul.f32 %v3981_v29, %v3730_v47  ;;  %v758_v24 = vadd.f32 %v738_v7, %v637_v21  ;;  %v4029_v25 = vmul.f32 %v3981_v29, %v3740_v50 }
 0x179   : > { %v755_v17 = vadd.f32 %v735_v30, %v634_v22  ;;  %v750_v44 = vadd.f32 %v730_v34, %v629_v32  ;;  %v752_v22 = vadd.f32 %v732_v35, %v631_v18  ;;  %v744_v19 = vmul.f32 %v3946_v0, %v3747_v52 }
 0x17a   : > { %v4035_v30 = vperm.slane %v527_v45, 3  ;;  %v747_v47 = vmul.f32 %v3946_v0, %v3756_v55  ;;  %v740_v50 = vmul.f32 %v3946_v0, %v3765_v58  ;;  %v851_v21 = vmul.f32 %v3981_v29, %v3770_v60 }
 0x17b   : > { %1300 = vperm.xlu1 %3065, %v1237_v26   ;;  %v761_v7 = vadd.f32 %v741_v48, %v640_v57  ;;  %v4048_v51 = vmul.f32 %v3981_v29, %v3749_v53  ;;  %v743_v52 = vmul.f32 %v3946_v0, %v3776_v62  ;;  %v854_v55 = vmul.f32 %v3981_v29, %v3779_v63 }
 0x17c   : > { %v4013_v37 = vpop.permute.xlu1 %932  ;;  %5644 = vst [vmem:[#allocation48_spill] sm:$0xff] %v4035_v30  ;;  %v746_v58 = vmul.f32 %v3946_v0, %v3787_v4  ;;  %v871_v45 = vadd.f32 %v851_v21, %v750_v44  ;;  %v972_v60 = vmul.f32 %v4035_v30, %v3865_v61  ;;  %v754_v57 = vadd.f32 %v734_v49, %v633_v8 }
 0x17d   : > { %5643 = vst [vmem:[#allocation47_spill] sm:$0xff] %v4013_v37  ;;  %v4021_v26 = vpop.permute.xlu0 %1098  ;;  %v4023_v40 = vpop.permute.xlu2 %1094  ;;  %v737_v37 = vmul.f32 %v3946_v0, %v3753_v54  ;;  %v751_v54 = vadd.f32 %v731_v12, %v630_v39  ;;  %v764_v18 = vadd.f32 %v744_v19, %v643_v1  ;;  %v4060_v53 = vmul.f32 %v3981_v29, %v3758_v56 }
 0x17e   : > { %v635_v62 = vmul.f32 %v3944_v9, %v3897_v59  ;;  %v767_v32 = vadd.f32 %v747_v47, %v646_v28  ;;  %v4064_v34 = vadd.f32 %v740_v50, %v639_v33  ;;  %v856_v63 = vmul.f32 %v3981_v29, %v3790_v5  ;;  %v4085_v5 = vld [vmem:[%s5536_s2] ss:$0 sm:$0xff] }
 0x17f   : > { %v757_v12 = vadd.f32 %v737_v37, %v636_v31  ;;  %v4074_v8 = vadd.f32 %v743_v52, %v642_v43  ;;  %v973_v56 = vmul.f32 %v4035_v30, %v3781_v2  ;;  %v859_v59 = vmul.f32 %v3981_v29, %v3804_v10  ;;  %v5650_v52 = vld [vmem:[#allocation27_spill] sm:$0xff] }
 0x180   : > { %v872_v61 = vadd.f32 %v852_v38, %v751_v54  ;;  %v874_v28 = vadd.f32 %v854_v55, %v753_v3  ;;  %v766_v31 = vadd.f32 %v746_v58, %v645_v36  ;;  %v992_v33 = vadd.f32 %v972_v60, %v871_v45  ;;  %v5651_v55 = vld [vmem:[#allocation28_spill] sm:$0xff] }
 0x181   : > { %v975_v35 = vmul.f32 %v4035_v30, %v3880_v20  ;;  %v853_v2 = vmul.f32 %v3981_v29, %v3818_v15  ;;  %v862_v10 = vmul.f32 %v3981_v29, %v3820_v16  ;;  %v756_v3 = vadd.f32 %v3977_v27, %v635_v62  ;;  %v5645_v27 = vld [vmem:[#allocation23_spill] sm:$0xff] }
 0x182   : > { %v638_v36 = vmul.f32 %v3944_v9, %v3909_v13  ;;  %v978_v37 = vmul.f32 %v4035_v30, %v3792_v6  ;;  %v876_v38 = vadd.f32 %v856_v63, %v755_v17  ;;  %v1403_v48 = vstv %s4070_s4  ;;  %v5646_v13 = vld [vmem:[#allocation24_spill] sm:$0xff]  ;;  %s5755_s4 = sld [smem:[#allocation69_spill]] }
 0x183   : > { %v867_v20 = vmul.f32 %v3981_v29, %v3893_v23  ;;  %v981_v39 = vmul.f32 %v4035_v30, %v3806_v11  ;;  %v879_v15 = vadd.f32 %v859_v59, %v758_v24  ;;  %v993_v44 = vadd.f32 %v973_v56, %v872_v61  ;;  %v5653_v59 = vld [vmem:[#allocation26_spill] sm:$0xff] }
 0x184   : > { %v4072_v4 = vpop.permute.xlu1 %944  ;;  %v977_v16 = vmul.f32 %v4035_v30, %v3895_v14  ;;  %v4109_v49 = vmul.f32 %v4035_v30, %v5645_v27  ;;  %v855_v6 = vmul.f32 %v3981_v29, %v5646_v13  ;;  %v1016_v17 = vadd.f32 %v4085_v5, %v992_v33  ;;  %v5649_v14 = vld [vmem:[#allocation25_spill] sm:$0xff] }
 0x185   : > { %v4080_v1 = vpop.permute.xlu0 %1118  ;;  %v995_v19 = vadd.f32 %v975_v35, %v874_v28  ;;  %v873_v47 = vadd.f32 %v853_v2, %v752_v22  ;;  %v882_v23 = vadd.f32 %v862_v10, %v761_v7  ;;  %vm4114_vm0 = vcmp.eq.s32.totalorder %v1403_v48, 1  ;;  %v5652_v7 = vld [vmem:[#allocation33_spill] sm:$0xff]  ;;  %v5654_v10 = vld [vmem:[#allocation36_spill] sm:$0xff] }
 0x186   : > { %v4089_v43 = vpop.permute.xlu2 %1106  ;;  %v877_v11 = vadd.f32 %v857_v42, %v756_v3  ;;  %v759_v24 = vadd.f32 %v3989_v41, %v638_v36  ;;  %v865_v21 = vmul.f32 %v3981_v29, %v5649_v14  ;;  %v858_v54 = vmul.f32 %v3981_v29, %v5650_v52 }
 0x187   : > { %v868_v58 = vmul.f32 %v3981_v29, %v5651_v55  ;;  %v887_v45 = vadd.f32 %v867_v20, %v766_v31  ;;  %v997_v22 = vadd.f32 %v977_v16, %v876_v38  ;;  %v980_v62 = vmul.f32 %v4035_v30, %v5652_v7  ;;  %v5655_v20 = vld [vmem:[#allocation30_spill] sm:$0xff]  ;;  %v5660_v55 = vld [vmem:[#allocation39_spill] sm:$0xff] }
 0x188   : > { %v1017_v63 = vadd.f32 %v4085_v5, %v993_v44  ;;  %v4131_v56 = vadd.f32 %v855_v6, %v754_v57  ;;  %v4135_v61 = vmul.f32 %v4035_v30, %v5653_v59  ;;  %v1036_v28 = vmax.f32 %v1016_v17, 0.0  ;;  %v4181_v59 = vld [vmem:[%s5665_s15] ss:$0 sm:$0xff]  ;;  %s5764_s15 = sld [smem:[#allocation70_spill]] }
 0x189   : > { %v1019_v31 = vadd.f32 %v4085_v5, %v995_v19  ;;  %v998_v35 = vadd.f32 %v978_v37, %v877_v11  ;;  %v880_v2 = vadd.f32 %v4029_v25, %v759_v24  ;;  %v641_v3 = vmul.f32 %v3944_v9, %v5654_v10  ;;  %v5656_v25 = vld [vmem:[#allocation34_spill] sm:$0xff]  ;;  %v5657_v11 = vld [vmem:[#allocation35_spill] sm:$0xff]  ;;  %5666 = vst [vmem:[#allocation25_spill] sm:$0xff] %v4181_v59 }
 0x18a   : > { %v885_v38 = vadd.f32 %v865_v21, %v764_v18  ;;  %v4143_v48 = vadd.f32 %v858_v54, %v757_v12  ;;  %v888_v57 = vadd.f32 %v868_v58, %v767_v32  ;;  %v861_v44 = vmul.f32 %v3981_v29, %v5655_v20  ;;  %v5658_v24 = vld [vmem:[#allocation46_spill] sm:$0xff] }
 0x18b   : > { %v1021_v16 = vadd.f32 %v4085_v5, %v997_v22  ;;  %v1000_v27 = vadd.f32 %v980_v62, %v879_v15  ;;  %v1037_v13 = vmax.f32 %v1017_v63, 0.0  ;;  %v1056_v37 = vmin.f32 %v1036_v28, 6.0  ;;  %v5659_v15 = vld [vmem:[#allocation31_spill] sm:$0xff] }
 0x18c   : > { %v957_v60 = vpop.permute.xlu1 %956  ;;  %v1039_v17 = vmax.f32 %v1019_v31, 0.0  ;;  %v974_v19 = vmul.f32 %v4035_v30, %v5656_v25  ;;  %v983_v18 = vmul.f32 %v4035_v30, %v5657_v11  ;;  %v1022_v12 = vadd.f32 %v4085_v5, %v998_v35 }
 0x18d   : > { %v988_v42 = vmul.f32 %v4035_v30, %v957_v60  ;;  %v4129_v41 = vpop.permute.xlu0 %1130  ;;  %v1001_v32 = vadd.f32 %v981_v39, %v880_v2  ;;  %v762_v14 = vadd.f32 %v5658_v24, %v641_v3  ;;  %v4156_v52 = vadd.f32 %v861_v44, %v4064_v34  ;;  %v4169_v39 = vld [vmem:[%s5663_s16] ss:$0 sm:$0xff]  ;;  %s501_s16 = sand.u32 1, %s5763_s26  }
 0x18e   : > { %v4138_v33 = vpop.permute.xlu2 %1114  ;;  %v864_v54 = vmul.f32 %v3981_v29, %v5659_v15  ;;  %v644_v58 = vmul.f32 %v3944_v9, %v5660_v55  ;;  %v1041_v7 = vmax.f32 %v1021_v16, 0.0  ;;  %v1024_v34 = vadd.f32 %v4085_v5, %v1000_v27  ;;  %s2889_s21 = sshll.u32 %s501_s16, 7  ;;  %s2751_s23 = scalar_lea.sflag [#allocation4], %s501_s16 }
 0x18f   : > { %v1008_v36 = vadd.f32 %v988_v42, %v887_v45  ;;  %v5661_v45 = vld [vmem:[#allocation43_spill] sm:$0xff]  ;;  %v4172_v62 = vmin.f32 %v1037_v13, 6.0  ;;  %v1453_v28 = vsel %vm4114_vm0, 0.0, %v1056_v37  ;;  %v4185_v31 = vmin.f32 %v1039_v17, 6.0  ;;  %v5667_v13 = vld [vmem:[#allocation38_spill] sm:$0xff]  ;;  %v5670_v17 = vld [vmem:[#allocation37_spill] sm:$0xff] }
 0x190   : > { %v989_v60 = vmul.f32 %v4035_v30, %v5661_v45  ;;  %v994_v35 = vadd.f32 %v974_v19, %v873_v47  ;;  %v1003_v2 = vadd.f32 %v983_v18, %v882_v23  ;;  %v1042_v3 = vmax.f32 %v1022_v12, 0.0  ;;  %s5371_s19 = scalar_lea.vmem [#allocation8], %s2889_s21 }
 0x191   : > { %v1032_v6 = vadd.f32 %v4085_v5, %v1008_v36  ;;  %v1025_v36 = vadd.f32 %v4085_v5, %v1001_v32  ;;  %v883_v20 = vadd.f32 %v4048_v51, %v762_v14  ;;  %v4196_v16 = vadd.f32 %v864_v54, %v4074_v8  ;;  %s2765_s13 = sshll.u32 %s5371_s19, 4  ;;  %s2766_s13 = int_to_ptr.vmem [resolvable:$true] %s2765_s13 }
 0x192   : > { %v765_v27 = vadd.f32 %v4009_v46, %v644_v58  ;;  %v986_v47 = vmul.f32 %v4035_v30, %v5667_v13  ;;  %v1009_v23 = vadd.f32 %v989_v60, %v888_v57  ;;  %v4206_v37 = vmin.f32 %v1041_v7, 6.0 }
 0x193   : > { %v1052_v21 = vmax.f32 %v1032_v6, 0.0  ;;  %v4204_v6 = vld [vmem:[%s5668_s8] ss:$0 sm:$0xff]  ;;  %v1044_v51 = vmax.f32 %v1024_v34, 0.0  ;;  %v976_v25 = vmul.f32 %v4035_v30, %v5670_v17  ;;  %v1454_v8 = vsel %vm4114_vm0, 0.0, %v4172_v62  ;;  %s5765_s8 = sld [smem:[#allocation14_spill]] }
 0x194   : > { %v4164_v22 = vpop.permute.xlu1 %968  ;;  %5669 = vst [vmem:[#allocation27_spill] sm:$0xff] %v4204_v6  ;;  %v4214_v46 = vmul.f32 %v4181_v59, %v1453_v28  ;;  %v4218_v57 = vmul.f32 %v4169_v39, %v4185_v31  ;;  %v1018_v19 = vadd.f32 %v4085_v5, %v994_v35  ;;  %v1027_v11 = vadd.f32 %v4085_v5, %v1003_v2 }
 0x195   : > { %5662 = vst [vmem:[#allocation23_spill] sm:$0xff] %v4164_v22  ;;  %v4174_v63 = vmin.f32 %v1052_v21, 6.0  ;;  %v4176_v42 = vpop.permute.xlu0 %1142  ;;  %v4224_v18 = vmul.f32 %v4181_v59, %v4185_v31  ;;  %v4226_v12 = vmin.f32 %v1042_v3, 6.0  ;;  %v1045_v32 = vmax.f32 %v1025_v36, 0.0 }
 0x196   : > { %v4187_v10 = vpop.permute.xlu2 %1126  ;;  %v1004_v50 = vadd.f32 %v4109_v49, %v883_v20  ;;  %v886_v24 = vadd.f32 %v4060_v53, %v765_v27  ;;  %v1006_v14 = vadd.f32 %v986_v47, %v885_v38  ;;  %v1033_v21 = vadd.f32 %v4085_v5, %v1009_v23  ;;  %v5676_v20 = vld [vmem:[#allocation42_spill] sm:$0xff] }
 0x197   : > { %5664 = vst [vmem:[#allocation24_spill] sm:$0xff] %v4174_v63  ;;  %v4193_v44 = vmul.f32 %v4169_v39, %v4174_v63  ;;  %v4232_v15 = vmul.f32 %v4181_v59, %v1454_v8  ;;  %v4236_v54 = vmul.f32 %v4204_v6, %v4206_v37  ;;  %v4238_v55 = vmin.f32 %v1044_v51, 6.0 }
 0x198   : > { %5671 = vst [vmem:[#allocation28_spill] sm:$0xff] %v4224_v18  ;;  %v996_v58 = vadd.f32 %v976_v25, %v4131_v56  ;;  %v4245_v49 = vmul.f32 %v4169_v39, %v4206_v37  ;;  %v1038_v53 = vmax.f32 %v1018_v19, 0.0  ;;  %v1047_v38 = vmax.f32 %v1027_v11, 0.0 }
 0x199   : > { %5672 = vst [vmem:[#allocation33_spill] sm:$0xff] %v4238_v55  ;;  %v4251_v7 = vmul.f32 %v4181_v59, %v4206_v37  ;;  %v4253_v34 = vmin.f32 %v1045_v32, 6.0  ;;  %v1028_v28 = vadd.f32 %v4085_v5, %v1004_v50  ;;  %v4258_v35 = vmul.f32 %v4169_v39, %v4226_v12  ;;  %s2910_s20 = sshll.u32 %s5765_s8, 5 }
 0x19a   : > { %v4262_v2 = vmul.f32 %v4204_v6, %v4226_v12  ;;  %v1007_v3 = vadd.f32 %v4135_v61, %v886_v24  ;;  %v1030_v36 = vadd.f32 %v4085_v5, %v1006_v14  ;;  %v979_v27 = vmul.f32 %v4035_v30, %v5676_v20 }
 0x19b   : > { %5673 = vst [vmem:[#allocation26_spill] sm:$0xff] %v4251_v7  ;;  %v1053_v13 = vmax.f32 %v1033_v21, 0.0  ;;  %v4270_v47 = vmul.f32 %v4204_v6, %v4238_v55  ;;  %v1020_v23 = vadd.f32 %v4085_v5, %v996_v58  ;;  %v4275_v51 = vmul.f32 %v4169_v39, %v4238_v55 }
 0x19c   : > { %5674 = vst [vmem:[#allocation36_spill] sm:$0xff] %v4253_v34  ;;  %v4279_v17 = vmul.f32 %v4181_v59, %v4226_v12  ;;  %v4281_v61 = vmin.f32 %v1038_v53, 6.0  ;;  %v4283_v25 = vmin.f32 %v1047_v38, 6.0  ;;  %v4287_v19 = vmul.f32 %v4181_v59, %v4238_v55 }
 0x19d   : > { %v4241_v45 = vpop.permute.xlu1 %1102  ;;  %v1155_v56 = vpop.permute.xlu0 %1154  ;;  %5675 = vst [vmem:[#allocation30_spill] sm:$0xff] %v4262_v2  ;;  %v1048_v11 = vmax.f32 %v1028_v28, 0.0  ;;  %v1157_v50 = vrot.slane %v4023_v40, 1  ;;  %v4293_v24 = vmul.f32 %v4169_v39, %v4253_v34  ;;  %v1031_v14 = vadd.f32 %v4085_v5, %v1007_v3 }
 0x19e   : > { %v4247_v60 = vpop.permute.xlu2 %1138  ;;  %5677 = vst [vmem:[#allocation34_spill] sm:$0xff] %v4270_v47  ;;  %v1186_v8 = vrot.slane %v1155_v56, 1  ;;  %v1050_v21 = vmax.f32 %v1030_v36, 0.0  ;;  %v999_v58 = vadd.f32 %v979_v27, %v4143_v48  ;;  %v4297_v53 = vmin.f32 %v1053_v13, 6.0  ;;  %v5681_v56 = vld [vmem:[#allocation47_spill] sm:$0xff] }
 0x19f   : > { %5678 = vst [vmem:[#allocation35_spill] sm:$0xff] %v4279_v17  ;;  %v1040_v38 = vmax.f32 %v1020_v23, 0.0  ;;  %v982_v20 = vmul.f32 %v4035_v30, %v5681_v56  ;;  %v4305_v40 = vmul.f32 %v4204_v6, %v4253_v34  ;;  %v4309_v32 = vmul.f32 %v4181_v59, %v4253_v34 }
 0x1a0   : > { %5679 = vst [vmem:[#allocation46_spill] sm:$0xff] %v4287_v19  ;;  %v4313_v3 = vmul.f32 %v4181_v59, %v4281_v61  ;;  %v4317_v48 = vmul.f32 %v4204_v6, %v4283_v25  ;;  %v4321_v36 = vmul.f32 %v4169_v39, %v4281_v61  ;;  %v1221_v27 = vmul.f32 %v1186_v8, %v4297_v53 }
 0x1a1   : > { %5680 = vst [vmem:[#allocation31_spill] sm:$0xff] %v4297_v53  ;;  %v4326_v23 = vmin.f32 %v1048_v11, 6.0  ;;  %v5686_v56 = vrot.slane %v4021_v26, 1  ;;  %v985_v29 = vmul.f32 %v4035_v30, %v4072_v4  ;;  %v1051_v0 = vmax.f32 %v1031_v14, 0.0 }
 0x1a2   : > { %5682 = vst [vmem:[#allocation39_spill] sm:$0xff] %v4305_v40  ;;  %v1023_v19 = vadd.f32 %v4085_v5, %v999_v58  ;;  %v4341_v11 = vmul.f32 %v4169_v39, %v4283_v25  ;;  %v4343_v40 = vmin.f32 %v1040_v38, 6.0  ;;  %v4351_v14 = vmul.f32 %v4181_v59, %v4283_v25 }
 0x1a3   : > { %5683 = vst [vmem:[#allocation43_spill] sm:$0xff] %v4309_v32  ;;  %v1159_v22 = vsel %vm1156_vm1, %v1157_v50, %v5686_v56  ;;  %v4334_v32 = vmin.f32 %v1050_v21, 6.0  ;;  %v1002_v56 = vadd.f32 %v982_v20, %v4156_v52  ;;  %v1205_v21 = vmul.f32 %v1157_v50, %v4172_v62 }
 0x1a4   : > { %5684 = vst [vmem:[#allocation38_spill] sm:$0xff] %v4313_v3  ;;  %v1206_v58 = vmul.f32 %v1159_v22, %v4281_v61  ;;  %v1005_v52 = vadd.f32 %v985_v29, %v4196_v16  ;;  %v4362_v20 = vmul.f32 %v4169_v39, %v4326_v23  ;;  %v4370_v62 = vmul.f32 %v4181_v59, %v4326_v23 }
 0x1a5   : > { %v4301_v28 = vpop.permute.xlu1 %1110  ;;  %5685 = vst [vmem:[#allocation37_spill] sm:$0xff] %v4317_v48  ;;  %v4337_v48 = vld [vmem:[#allocation5] ss:$0 sm:$0xff]  ;;  %v4356_v17 = vpop.permute.xlu0 %1248  ;;  %v4372_v22 = vmin.f32 %v1051_v0, 6.0  ;;  %v4376_v50 = vmul.f32 %v4204_v6, %v4334_v32  ;;  %v1026_v16 = vadd.f32 %v4085_v5, %v1002_v56  ;;  %v4392_v0 = vmul.f32 %v4204_v6, %v4343_v40 }
 0x1a6   : > { %v4324_v13 = vpop.permute.xlu2 %1150  ;;  %5687 = vst [vmem:[#allocation42_spill] sm:$0xff] %v4351_v14  ;;  %v1593_v30 = vmul.f32 %v4337_v48, %v1221_v27  ;;  %v1043_v27 = vmax.f32 %v1023_v19, 0.0  ;;  %v1577_v19 = vmul.f32 %v4337_v48, %v1205_v21  ;;  %v1029_v7 = vadd.f32 %v4085_v5, %v1005_v52 }
 0x1a7   : > { %v5573_v9 = vrot.slane %v4324_v13, 1  ;;  %5689 = vst [vmem:[#allocation49_spill] sm:$0xff] %v4370_v62  ;;  %v4388_v62 = vmul.f32 %v4169_v39, %v4334_v32  ;;  %v4417_v47 = vmul.f32 %v4169_v39, %v4372_v22  ;;  %v1162_v5 = vrot.slane %v4089_v43, 1 }
 0x1a8   : > { %5690 = vst [vmem:[#allocation50_spill] sm:$0xff] %v4376_v50  ;;  %v1642_v14 = vrot.slane %v1593_v30, 7  ;;  %v4409_v21 = vmin.f32 %v1043_v27, 6.0  ;;  %v1611_v2 = vrot.slane %v1577_v19, 7  ;;  %v1049_v18 = vmax.f32 %v1029_v7, 0.0 }
 0x1a9   : > { %v1187_v4 = vsel %vm1156_vm1, %v5573_v9, %v1186_v8  ;;  %v4366_v8 = vmul.f32 %v4204_v6, %v4326_v23  ;;  %5691 = vst [vmem:[#allocation51_spill] sm:$0xff] %v4388_v62  ;;  %v1160_v62 = vrot.slane %v4241_v45, 1  ;;  %v1166_v45 = vrot.slane %v4138_v33, 1 }
 0x1aa   : > { %v1220_v38 = vmul.f32 %v1187_v4, %v4174_v63  ;;  %v4384_v4 = vmul.f32 %v4169_v39, %v4343_v40  ;;  %v4407_v63 = vmul.f32 %v4181_v59, %v4343_v40  ;;  %5693 = vst [vmem:[#allocation53_spill] sm:$0xff] %v4417_v47  ;;  %v1174_v33 = vrot.slane %v4129_v41, 1 }
 0x1ab   : > { %5688 = vst [vmem:[#allocation47_spill] sm:$0xff] %v4366_v8  ;;  %v1572_v8 = vmul.f32 %v4169_v39, %v4297_v53  ;;  %v1046_v53 = vmax.f32 %v1026_v16, 0.0  ;;  %v1163_v43 = vsel %vm1156_vm1, %v1160_v62, %v1162_v5 }
 0x1ac   : > { %v4379_v29 = vmul.f32 %v4337_v48, %v1220_v38  ;;  %v4396_v38 = vmul.f32 %v4337_v48, %v1206_v58  ;;  %5692 = vst [vmem:[#allocation52_spill] sm:$0xff] %v4407_v63  ;;  %v1164_v58 = vrot.slane %v4301_v28, 1  ;;  %v1172_v28 = vrot.slane %v4187_v10, 1 }
 0x1ad   : > { %v1123_v9 = vpop.permute.xlu1 %1122  ;;  %v5580_v63 = vrot.slane %v4247_v60, 1  ;;  %v4435_v10 = vpop.permute.xlu0 %1260  ;;  %v4437_v27 = vmin.f32 %v1046_v53, 6.0 }
 0x1ae   : > { %v5578_v56 = vrot.slane %v4379_v29, 7  ;;  %v4399_v50 = vpop.permute.xlu2 %1244  ;;  %v1165_v19 = vsel %vm1156_vm1, %v1162_v5, %v1164_v58  ;;  %v1170_v7 = vrot.slane %v1123_v9, 1  ;;  %v1175_v41 = vsel %vm1156_vm1, %v1172_v28, %v1174_v33 }
 0x1af   : > { %v1208_v5 = vmul.f32 %v1163_v43, %v4343_v40  ;;  %v5697_v9 = vrot.slane %v4396_v38, 7  ;;  %v4463_v43 = vmul.f32 %v4204_v6, %v4409_v21 }
 0x1b0   : > { %v1643_v30 = vsel %vm1302_vm2, %v5578_v56, %v1642_v14  ;;  %v1168_v14 = vrot.slane %v4080_v1, 1  ;;  %v5695_v56 = vrot.slane %v4021_v26, 1 }
 0x1b1   : > { %v4421_v52 = vadd.f32 %v1643_v30, %v1572_v8  ;;  %v5579_v8 = vrot.slane %v4176_v42, 1  ;;  %v1167_v30 = vsel %vm1156_vm1, %v1164_v58, %v1166_v45  ;;  %5698 = vst [vmem:[#allocation56_spill] sm:$0xff] %v4463_v43  ;;  %v1580_v3 = vmul.f32 %v4337_v48, %v1208_v5 }
 0x1b2   : > { %v1161_v16 = vsel %vm1156_vm1, %v5695_v56, %v1160_v62  ;;  %v1169_v1 = vsel %vm1156_vm1, %v1166_v45, %v1168_v14  ;;  %v4442_v56 = vmul.f32 %v4204_v6, %v4372_v22  ;;  %v1613_v45 = vsel %vm1302_vm2, %v1611_v2, %v5697_v9 }
 0x1b3   : > { %5694 = vst [vmem:[#allocation54_spill] sm:$0xff] %v4421_v52  ;;  %v1207_v62 = vmul.f32 %v1161_v16, %v4185_v31  ;;  %v1181_v53 = vsel %vm1156_vm1, %v5580_v63, %v5579_v8  ;;  %v4457_v52 = vmin.f32 %v1049_v18, 6.0  ;;  %v1210_v16 = vmul.f32 %v1167_v30, %v4226_v12 }
 0x1b4   : > { %5696 = vst [vmem:[#allocation55_spill] sm:$0xff] %v4442_v56  ;;  %v1209_v56 = vmul.f32 %v1165_v19, %v4206_v37  ;;  %v1211_v47 = vmul.f32 %v1169_v1, %v4409_v21  ;;  %v4468_v8 = vmul.f32 %v4169_v39, %v4409_v21  ;;  %v4472_v63 = vmul.f32 %v4181_v59, %v4409_v21 }
 0x1b5   : > { %v1135_v26 = vpop.permute.xlu1 %1134  ;;  %v1214_v18 = vmul.f32 %v1175_v41, %v4437_v27  ;;  %v1217_v2 = vmul.f32 %v1181_v53, %v4457_v52  ;;  %v1171_v19 = vsel %vm1156_vm1, %v1168_v14, %v1170_v7  ;;  %v1173_v30 = vsel %vm1156_vm1, %v1170_v7, %v1172_v28 }
 0x1b6   : > { %v4452_v58 = vpop.permute.xlu2 %1256  ;;  %5699 = vst [vmem:[#allocation57_spill] sm:$0xff] %v4472_v63  ;;  %v4480_v9 = vmul.f32 %v4204_v6, %v4437_v27  ;;  %v4483_v1 = vadd.f32 %v1613_v45, %v4321_v36  ;;  %v1579_v43 = vmul.f32 %v4337_v48, %v1207_v62  ;;  %v1581_v63 = vmul.f32 %v4337_v48, %v1209_v56 }
 0x1b7   : > { %v1582_v41 = vmul.f32 %v4337_v48, %v1210_v16  ;;  %v4491_v14 = vmul.f32 %v4169_v39, %v4437_v27  ;;  %v1304_v28 = vrot.slane %v4399_v50, 7  ;;  %v1212_v7 = vmul.f32 %v1171_v19, %v4238_v55 }
 0x1b8   : > { %5700 = vst [vmem:[#allocation58_spill] sm:$0xff] %v4480_v9  ;;  %v1213_v53 = vmul.f32 %v1173_v30, %v4253_v34  ;;  %v1176_v36 = vrot.slane %v1135_v26, 1  ;;  %v4498_v62 = vmul.f32 %v4181_v59, %v4437_v27  ;;  %v1583_v5 = vmul.f32 %v4337_v48, %v1211_v47  ;;  %v4514_v9 = vpop.permute.xlu0 %1272 }
 0x1b9   : > { %v4502_v56 = vmul.f32 %v4337_v48, %v1214_v18  ;;  %v4505_v45 = vmul.f32 %v4337_v48, %v1217_v2  ;;  %v5585_v16 = vrot.slane %v4356_v17, 7  ;;  %v4512_v19 = vmul.f32 %v4204_v6, %v4457_v52 }
 0x1ba   : > { %5701 = vst [vmem:[#allocation59_spill] sm:$0xff] %v4498_v62  ;;  %v1614_v26 = vrot.slane %v1579_v43, 7  ;;  %v1616_v30 = vrot.slane %v1580_v3, 7  ;;  %v1618_v62 = vrot.slane %v1581_v63, 7  ;;  %v1620_v18 = vrot.slane %v1582_v41, 7 }
 0x1bb   : > { %5702 = vst [vmem:[#allocation60_spill] sm:$0xff] %v4512_v19  ;;  %v1307_v2 = vsel %vm1302_vm2, %v1304_v28, %v5585_v16  ;;  %v4522_v34 = vmul.f32 %v4169_v39, %v4457_v52  ;;  %v1584_v55 = vmul.f32 %v4337_v48, %v1212_v7  ;;  %v1585_v6 = vmul.f32 %v4337_v48, %v1213_v53 }
 0x1bc   : > { %v1177_v3 = vsel %vm1156_vm1, %v1174_v33, %v1176_v36  ;;  %v5704_v43 = vrot.slane %v4324_v13, 1  ;;  %v1622_v41 = vrot.slane %v1583_v5, 7  ;;  %v1628_v19 = vrot.slane %v4502_v56, 7 }
 0x1bd   : > { %v4508_v50 = vpop.permute.xlu1 %1146  ;;  %5703 = vst [vmem:[#allocation61_spill] sm:$0xff] %v4522_v34  ;;  %v4536_v39 = vmul.f32 %v4181_v59, %v4457_v52  ;;  %v5706_v7 = vrot.slane %v4396_v38, 7  ;;  %v1617_v33 = vsel %vm1302_vm2, %v1614_v26, %v1616_v30  ;;  %v5707_v13 = vrot.slane %v4247_v60, 1  ;;  %v4547_v34 = vld [vmem:[#allocation7] ss:$0 sm:$0xff] }
 0x1be   : > { %v1182_v47 = vrot.slane %v4508_v50, 1  ;;  %v4530_v63 = vpop.permute.xlu2 %1268  ;;  %v1619_v56 = vsel %vm1302_vm2, %v1616_v30, %v1618_v62  ;;  %v1353_v16 = vmul.f32 %v1307_v2, %v4343_v40  ;;  %v1215_v59 = vmul.f32 %v1177_v3, %v4283_v25 }
 0x1bf   : > { %5705 = vst [vmem:[#allocation62_spill] sm:$0xff] %v4536_v39  ;;  %v1615_v53 = vsel %vm1302_vm2, %v5706_v7, %v1614_v26  ;;  %v1310_v38 = vrot.slane %v4452_v58, 7  ;;  %v1621_v7 = vsel %vm1302_vm2, %v1618_v62, %v1620_v18  ;;  %v1624_v39 = vrot.slane %v1584_v55, 7 }
 0x1c0   : > { %v1185_v50 = vsel %vm1156_vm1, %v1182_v47, %v5704_v43  ;;  %v1179_v43 = vsel %vm1156_vm1, %v1176_v36, %v5707_v13  ;;  %v1626_v26 = vrot.slane %v1585_v6, 7  ;;  %v1661_v36 = vadd.f32 %v1615_v53, %v4218_v57 }
 0x1c1   : > { %v1219_v5 = vmul.f32 %v1185_v50, %v4372_v22  ;;  %v4558_v50 = vadd.f32 %v1617_v33, %v4384_v4  ;;  %v1312_v30 = vrot.slane %v4435_v10, 7  ;;  %v1216_v40 = vmul.f32 %v1179_v43, %v4326_v23  ;;  %v4579_v33 = vpop.permute.xlu0 %1284  ;;  %v5717_v10 = vld [vmem:[#allocation33_spill] sm:$0xff] }
 0x1c2   : > { %v1623_v3 = vsel %vm1302_vm2, %v1620_v18, %v1622_v41  ;;  %v4564_v58 = vadd.f32 %v1619_v56, %v4245_v49  ;;  %v4568_v62 = vadd.f32 %v1621_v7, %v4258_v35  ;;  %v4571_v57 = vmul.f32 %v4547_v34, %v1353_v16 }
 0x1c3   : > { %v4554_v60 = vmul.f32 %v4337_v48, %v1219_v5  ;;  %v1587_v4 = vmul.f32 %v4337_v48, %v1215_v59  ;;  %v1313_v53 = vsel %vm1302_vm2, %v1310_v38, %v1312_v30  ;;  %v1625_v18 = vsel %vm1302_vm2, %v1622_v41, %v1624_v39 }
 0x1c4   : > { %v1627_v49 = vsel %vm1302_vm2, %v1624_v39, %v1626_v26  ;;  %v5708_v13 = vrot.slane %v4379_v29, 7  ;;  %v1588_v59 = vmul.f32 %v4337_v48, %v1216_v40  ;;  %v4594_v39 = vadd.f32 %v1623_v3, %v4468_v8 }
 0x1c5   : > { %v1241_v2 = vpop.permute.xlu1 %1240  ;;  %v1638_v6 = vrot.slane %v4554_v60, 7  ;;  %v1629_v29 = vsel %vm1302_vm2, %v1626_v26, %v1628_v19  ;;  %v1356_v56 = vmul.f32 %v1313_v53, %v4409_v21  ;;  %v1316_v7 = vrot.slane %v4530_v63, 7 }
 0x1c6   : > { %v1303_v55 = vrot.slane %v1241_v2, 7  ;;  %v4599_v2 = vpop.permute.xlu2 %1280  ;;  %v1630_v40 = vrot.slane %v1587_v4, 7  ;;  %v4608_v8 = vadd.f32 %v1627_v49, %v4293_v24  ;;  %v1318_v26 = vrot.slane %v4514_v9, 7 }
 0x1c7   : > { %v1641_v35 = vsel %vm1302_vm2, %v1638_v6, %v5708_v13  ;;  %v5709_v21 = vrot.slane %v4176_v42, 1 }
 0x1c8   : > { %v1305_v16 = vsel %vm1302_vm2, %v1303_v55, %v1304_v28  ;;  %v4589_v43 = vadd.f32 %v1641_v35, %v4193_v44  ;;  %v1351_v5 = vmul.f32 %v1303_v55, %v4281_v61  ;;  %v1717_v28 = vrot.slane %v4571_v57, 1 }
 0x1c9   : > { %v1352_v41 = vmul.f32 %v1305_v16, %v4185_v31  ;;  %v4605_v31 = vadd.f32 %v1625_v18, %v4275_v51  ;;  %v1183_v3 = vsel %vm1156_vm1, %v5709_v21, %v1182_v47  ;;  %v4615_v55 = vadd.f32 %v1629_v29, %v4491_v14 }
 0x1ca   : > { %v1680_v44 = vmul.f32 %v4547_v34, %v1351_v5  ;;  %v1632_v57 = vrot.slane %v1588_v59, 7  ;;  %v4618_v35 = vmul.f32 %v4547_v34, %v1356_v56  ;;  %v1324_v51 = vrot.slane %v4579_v33, 7 }
 0x1cb   : > { %v1681_v61 = vmul.f32 %v4547_v34, %v1352_v41  ;;  %v1319_v42 = vsel %vm1302_vm2, %v1316_v7, %v1318_v26  ;;  %v1631_v47 = vsel %vm1302_vm2, %v1628_v19, %v1630_v40  ;;  %v1218_v14 = vmul.f32 %v1183_v3, %v4334_v32  ;;  %v4640_v3 = vpop.permute.xlu0 %1296 }
 0x1cc   : > { %v1714_v4 = vrot.slane %v1680_v44, 1  ;;  %v5710_v5 = vrot.slane %v4356_v17, 7  ;;  %v1633_v56 = vsel %vm1302_vm2, %v1630_v40, %v1632_v57  ;;  %v1359_v44 = vmul.f32 %v1319_v42, %v4437_v27  ;;  %v4645_v17 = vld [vmem:[%s5711_s24] ss:$0 sm:$0xff]  ;;  %s2762_s24 = sadd.s32 %s2910_s20, %s2909_s25 }
 0x1cd   : > { %v1715_v53 = vrot.slane %v1681_v61, 1  ;;  %v1253_v13 = vpop.permute.xlu1 %1252  ;;  %v1723_v21 = vrot.slane %v4618_v35, 1  ;;  %v5712_v27 = vrot.slane %v4505_v45, 7  ;;  %s2911_s14 = sshll.u32 %s2762_s24, 3 }
 0x1ce   : > { %v1308_v24 = vrot.slane %v1253_v13, 7  ;;  %v4666_v13 = vpop.permute.xlu2 %1292 }
 0x1cf   : > { %v1716_v18 = vsel %vm1156_vm1, %v1714_v4, %v1715_v53  ;;  %v1718_v49 = vsel %vm1156_vm1, %v1715_v53, %v1717_v28  ;;  %v4659_v53 = vadd.f32 %v1633_v56, %v4362_v20 }
 0x1d0   : > { %v1763_v16 = vadd.f32 %v1716_v18, %v4483_v1  ;;  %v1764_v59 = vadd.f32 %v1718_v49, %v1661_v36  ;;  %v1309_v41 = vsel %vm1302_vm2, %v5710_v5, %v1308_v24  ;;  %v1311_v29 = vsel %vm1302_vm2, %v1308_v24, %v1310_v38 }
 0x1d1   : > { %v1354_v19 = vmul.f32 %v1309_v41, %v4206_v37  ;;  %v1355_v61 = vmul.f32 %v1311_v29, %v4226_v12  ;;  %v1322_v36 = vrot.slane %v4599_v2, 7  ;;  %v1635_v37 = vsel %vm1302_vm2, %v1632_v57, %v5712_v27  ;;  %v5714_v27 = vld [vmem:[#allocation28_spill] sm:$0xff] }
 0x1d2   : > { %v1799_v1 = vadd.f32 %v4214_v46, %v1763_v16  ;;  %v1800_v38 = vadd.f32 %v4232_v15, %v1764_v59  ;;  %v4654_v12 = vadd.f32 %v1631_v47, %v4341_v11  ;;  %v4662_v46 = vmul.f32 %v4337_v48, %v1218_v14 }
 0x1d3   : > { %v1683_v40 = vmul.f32 %v4547_v34, %v1354_v19  ;;  %v1684_v4 = vmul.f32 %v4547_v34, %v1355_v61  ;;  %v4669_v57 = vmul.f32 %v4547_v34, %v1359_v44  ;;  %v1330_v11 = vrot.slane %v4640_v3, 7 }
 0x1d4   : > { %v1835_v15 = vadd.f32 %v4392_v0, %v1799_v1  ;;  %v1836_v2 = vadd.f32 %v4236_v54, %v1800_v38  ;;  %v1325_v48 = vsel %vm1302_vm2, %v1322_v36, %v1324_v51  ;;  %v1328_v16 = vrot.slane %v4666_v13, 7  ;;  %v5713_v38 = vld [vmem:[#allocation38_spill] sm:$0xff] }
 0x1d5   : > { %v1719_v42 = vrot.slane %v1683_v40, 1  ;;  %v1721_v24 = vrot.slane %v1684_v4, 1  ;;  %v1265_v47 = vpop.permute.xlu1 %1264  ;;  %v1362_v56 = vmul.f32 %v1325_v48, %v4457_v52  ;;  %v5715_v40 = vld [vmem:[#allocation61_spill] sm:$0xff]  ;;  %v1636_v63 = vrot.slane %v4662_v46, 7 }
 0x1d6   : > { %v1855_v20 = vadd.f32 %v4645_v17, %v1835_v15  ;;  %v1856_v18 = vadd.f32 %v4645_v17, %v1836_v2  ;;  %v1314_v0 = vrot.slane %v1265_v47, 7  ;;  %v4700_v52 = vadd.f32 %v1635_v37, %v5715_v40 }
 0x1d7   : > { %v1720_v54 = vsel %vm1156_vm1, %v1717_v28, %v1719_v42  ;;  %v1722_v14 = vsel %vm1156_vm1, %v1719_v42, %v1721_v24  ;;  %v1724_v49 = vsel %vm1156_vm1, %v1721_v24, %v1723_v21  ;;  %v5720_v24 = vld [vmem:[#allocation56_spill] sm:$0xff]  ;;  %v1729_v37 = vrot.slane %v4669_v57, 1 }
 0x1d8   : > { %v1871_v59 = vmax.f32 %v1855_v20, 0.0  ;;  %v1872_v5 = vmax.f32 %v1856_v18, 0.0  ;;  %v1765_v41 = vadd.f32 %v1720_v54, %v4558_v50  ;;  %v1766_v29 = vadd.f32 %v1722_v14, %v4564_v58  ;;  %v5721_v18 = vld [vmem:[#allocation34_spill] sm:$0xff] }
 0x1d9   : > { %v1767_v44 = vadd.f32 %v1724_v49, %v4568_v62  ;;  %v1315_v28 = vsel %vm1302_vm2, %v1312_v30, %v1314_v0  ;;  %v1317_v19 = vsel %vm1302_vm2, %v1314_v0, %v1316_v7  ;;  %v5716_v62 = vld [vmem:[#allocation52_spill] sm:$0xff]  ;;  %v5719_v7 = vld [vmem:[#allocation30_spill] sm:$0xff]  ;;  %v1331_v20 = vsel %vm1302_vm2, %v1328_v16, %v1330_v11 }
 0x1da   : > { %v4693_v61 = vmin.f32 %v1871_v59, 6.0  ;;  %v4695_v1 = vmin.f32 %v1872_v5, 6.0  ;;  %v1801_v50 = vadd.f32 %v5713_v38, %v1765_v41  ;;  %v1802_v58 = vadd.f32 %v5714_v27, %v1766_v29  ;;  %v5718_v30 = vld [vmem:[#allocation36_spill] sm:$0xff] }
 0x1db   : > { %v1803_v4 = vadd.f32 %v5716_v62, %v1767_v44  ;;  %v1357_v15 = vmul.f32 %v1315_v28, %v5717_v10  ;;  %v1358_v2 = vmul.f32 %v1317_v19, %v5718_v30  ;;  %v4720_v14 = vmul.f32 %v4547_v34, %v1362_v56  ;;  %v5722_v29 = vld [vmem:[#allocation24_spill] sm:$0xff] }
 0x1dc   : > { %v1837_v42 = vadd.f32 %v5719_v7, %v1801_v50  ;;  %v1838_v47 = vadd.f32 %v5720_v24, %v1802_v58  ;;  %1911 = vperm.xlu0 %3063, %v4695_v1   ;;  %1906 = vperm.xlu2 %3064, %v4693_v61   ;;  %v1365_v44 = vmul.f32 %v1331_v20, %v5722_v29  ;;  %v5723_v30 = vrot.slane %v4505_v45, 7  ;;  %v5724_v7 = vld [vmem:[#allocation26_spill] sm:$0xff]  ;;  %v5725_v24 = vld [vmem:[#allocation35_spill] sm:$0xff] }
 0x1dd   : > { %v1839_v48 = vadd.f32 %v5721_v18, %v1803_v4  ;;  %v1686_v46 = vmul.f32 %v4547_v34, %v1357_v15  ;;  %v1687_v0 = vmul.f32 %v4547_v34, %v1358_v2  ;;  %v1277_v54 = vpop.permute.xlu1 %1276  ;;  %v1735_v20 = vrot.slane %v4720_v14, 1  ;;  %v5727_v18 = vld [vmem:[#allocation39_spill] sm:$0xff] }
 0x1de   : > { %v1857_v49 = vadd.f32 %v4645_v17, %v1837_v42  ;;  %v1858_v59 = vadd.f32 %v4645_v17, %v1838_v47  ;;  %v1320_v5 = vrot.slane %v1277_v54, 7  ;;  %v1637_v2 = vsel %vm1302_vm2, %v5723_v30, %v1636_v63 }
 0x1df   : > { %v1859_v41 = vadd.f32 %v4645_v17, %v1839_v48  ;;  %v1725_v57 = vrot.slane %v1686_v46, 1  ;;  %v1727_v28 = vrot.slane %v1687_v0, 1  ;;  %v5728_v46 = vld [vmem:[#allocation58_spill] sm:$0xff]  ;;  %v4764_v60 = vmul.f32 %v4547_v34, %v1365_v44 }
 0x1e0   : > { %v1873_v19 = vmax.f32 %v1857_v49, 0.0  ;;  %v1874_v38 = vmax.f32 %v1858_v59, 0.0  ;;  %v1321_v50 = vsel %vm1302_vm2, %v1318_v26, %v1320_v5  ;;  %v1323_v56 = vsel %vm1302_vm2, %v1320_v5, %v1322_v36 }
 0x1e1   : > { %v1875_v27 = vmax.f32 %v1859_v41, 0.0  ;;  %v1726_v58 = vsel %vm1156_vm1, %v1723_v21, %v1725_v57  ;;  %v1728_v40 = vsel %vm1156_vm1, %v1725_v57, %v1727_v28  ;;  %v1730_v62 = vsel %vm1156_vm1, %v1727_v28, %v1729_v37 }
 0x1e2   : > { %v4735_v4 = vmin.f32 %v1873_v19, 6.0  ;;  %v4737_v10 = vmin.f32 %v1874_v38, 6.0  ;;  %v1768_v15 = vadd.f32 %v1726_v58, %v4594_v39  ;;  %v1769_v9 = vadd.f32 %v1728_v40, %v4605_v31  ;;  %v5726_v31 = vld [vmem:[#allocation57_spill] sm:$0xff] }
 0x1e3   : > { %v4741_v26 = vmin.f32 %v1875_v27, 6.0  ;;  %v1770_v36 = vadd.f32 %v1730_v62, %v4608_v8  ;;  %v1360_v35 = vmul.f32 %v1321_v50, %v4283_v25  ;;  %v1361_v21 = vmul.f32 %v1323_v56, %v4326_v23  ;;  %v5730_v62 = vld [vmem:[#allocation46_spill] sm:$0xff] }
 0x1e4   : > { %v1804_v42 = vadd.f32 %v5724_v7, %v1768_v15  ;;  %v1805_v47 = vadd.f32 %v5725_v24, %v1769_v9  ;;  %1916 = vperm.xlu1 %3065, %v4735_v4   ;;  %1921 = vperm.xlu2 %3064, %v4737_v10   ;;  %v1639_v39 = vsel %vm1302_vm2, %v1636_v63, %v1638_v6  ;;  %v5729_v6 = vld [vmem:[#allocation37_spill] sm:$0xff]  ;;  %v5731_v9 = vld [vmem:[#allocation43_spill] sm:$0xff] }
 0x1e5   : > { %v1806_v25 = vadd.f32 %v5726_v31, %v1770_v36  ;;  %v1689_v23 = vmul.f32 %v4547_v34, %v1360_v35  ;;  %v1690_v45 = vmul.f32 %v4547_v34, %v1361_v21  ;;  %1926 = vperm.xlu0 %3063, %v4741_v26   ;;  %v1289_v8 = vpop.permute.xlu1 %1288  ;;  %v5733_v7 = vld [vmem:[#allocation51_spill] sm:$0xff]  ;;  %v5735_v31 = vld [vmem:[#allocation60_spill] sm:$0xff] }
 0x1e6   : > { %v1840_v48 = vadd.f32 %v5727_v18, %v1804_v42  ;;  %v1841_v0 = vadd.f32 %v5728_v46, %v1805_v47  ;;  %v1326_v54 = vrot.slane %v1289_v8, 7  ;;  %v1672_v42 = vadd.f32 %v1637_v2, %v5733_v7  ;;  %v5734_v24 = vld [vmem:[#allocation47_spill] sm:$0xff]  ;;  %v5736_v8 = vld [vmem:[#allocation50_spill] sm:$0xff] }
 0x1e7   : > { %v1842_v63 = vadd.f32 %v5729_v6, %v1806_v25  ;;  %v1731_v49 = vrot.slane %v1689_v23, 1  ;;  %v1733_v59 = vrot.slane %v1690_v45, 1  ;;  %v1741_v45 = vrot.slane %v4764_v60, 1 }
 0x1e8   : > { %v1860_v5 = vadd.f32 %v4645_v17, %v1840_v48  ;;  %v1861_v41 = vadd.f32 %v4645_v17, %v1841_v0  ;;  %v1327_v14 = vsel %vm1302_vm2, %v1324_v51, %v1326_v54  ;;  %v1329_v57 = vsel %vm1302_vm2, %v1326_v54, %v1328_v16  ;;  %v5737_v0 = vld [vmem:[#allocation53_spill] sm:$0xff] }
 0x1e9   : > { %v1862_v28 = vadd.f32 %v4645_v17, %v1842_v63  ;;  %v1732_v44 = vsel %vm1156_vm1, %v1729_v37, %v1731_v49  ;;  %v1734_v19 = vsel %vm1156_vm1, %v1731_v49, %v1733_v59  ;;  %v1736_v38 = vsel %vm1156_vm1, %v1733_v59, %v1735_v20 }
 0x1ea   : > { %v1876_v50 = vmax.f32 %v1860_v5, 0.0  ;;  %v1877_v56 = vmax.f32 %v1861_v41, 0.0  ;;  %v1771_v27 = vadd.f32 %v1732_v44, %v4615_v55  ;;  %v1772_v33 = vadd.f32 %v1734_v19, %v4654_v12  ;;  %v5732_v55 = vld [vmem:[#allocation59_spill] sm:$0xff] }
 0x1eb   : > { %v1878_v58 = vmax.f32 %v1862_v28, 0.0  ;;  %v1773_v51 = vadd.f32 %v1736_v38, %v4659_v53  ;;  %v1363_v13 = vmul.f32 %v1327_v14, %v4334_v32  ;;  %v1364_v16 = vmul.f32 %v1329_v57, %v4372_v22  ;;  %v5738_v28 = vld [vmem:[#allocation27_spill] sm:$0xff] }
 0x1ec   : > { %v4784_v40 = vmin.f32 %v1876_v50, 6.0  ;;  %v4786_v37 = vmin.f32 %v1877_v56, 6.0  ;;  %v1807_v15 = vadd.f32 %v5730_v62, %v1771_v27  ;;  %v1808_v36 = vadd.f32 %v5731_v9, %v1772_v33  ;;  %v5739_v38 = vld [vmem:[#allocation31_spill] sm:$0xff]  ;;  %v5741_v33 = vld [vmem:[#allocation49_spill] sm:$0xff] }
 0x1ed   : > { %v4790_v35 = vmin.f32 %v1878_v58, 6.0  ;;  %v1809_v21 = vadd.f32 %v5732_v55, %v1773_v51  ;;  %v1692_v12 = vmul.f32 %v4547_v34, %v1363_v13  ;;  %v1693_v53 = vmul.f32 %v4547_v34, %v1364_v16  ;;  %v4795_v30 = vpop.permute.xlu1 %1300  ;;  %v5742_v13 = vld [vmem:[#allocation62_spill] sm:$0xff]  ;;  %v5743_v62 = vld [vmem:[#allocation55_spill] sm:$0xff] }
 0x1ee   : > { %v1843_v47 = vadd.f32 %v5734_v24, %v1807_v15  ;;  %v1844_v25 = vadd.f32 %v5735_v31, %v1808_v36  ;;  %1931 = vperm.xlu1 %3065, %v4784_v40   ;;  %1936 = vperm.xlu2 %3064, %v4786_v37   ;;  %v1332_v23 = vrot.slane %v4795_v30, 7  ;;  %v1673_v2 = vadd.f32 %v1639_v39, %v5737_v0  ;;  %v5744_v31 = vld [vmem:[#allocation25_spill] sm:$0xff] }
 0x1ef   : > { %v1845_v18 = vadd.f32 %v5736_v8, %v1809_v21  ;;  %v1737_v48 = vrot.slane %v1692_v12, 1  ;;  %v1739_v46 = vrot.slane %v1693_v53, 1  ;;  %1941 = vperm.xlu0 %3063, %v4790_v35   ;;  %v1831_v44 = vmul.f32 %v5738_v28, %v5722_v29 }
 0x1f0   : > { %v1863_v54 = vadd.f32 %v4645_v17, %v1843_v47  ;;  %v1864_v6 = vadd.f32 %v4645_v17, %v1844_v25  ;;  %v1333_v63 = vsel %vm1302_vm2, %v1330_v11, %v1332_v23  ;;  %v1832_v51 = vmul.f32 %v5738_v28, %v5739_v38 }
 0x1f1   : > { %v1865_v60 = vadd.f32 %v4645_v17, %v1845_v18  ;;  %v1738_v49 = vsel %vm1156_vm1, %v1735_v20, %v1737_v48  ;;  %v1740_v59 = vsel %vm1156_vm1, %v1737_v48, %v1739_v46  ;;  %v1742_v5 = vsel %vm1156_vm1, %v1739_v46, %v1741_v45  ;;  %v5740_v20 = vld [vmem:[#allocation42_spill] sm:$0xff] }
 0x1f2   : > { %v1879_v41 = vmax.f32 %v1863_v54, 0.0  ;;  %v1880_v39 = vmax.f32 %v1864_v6, 0.0  ;;  %v1774_v14 = vadd.f32 %v1738_v49, %v4700_v52  ;;  %v1775_v57 = vadd.f32 %v1740_v59, %v1672_v42  ;;  %v5747_v49 = vld [vmem:[#allocation41_spill] sm:$0xff] }
 0x1f3   : > { %v1881_v19 = vmax.f32 %v1865_v60, 0.0  ;;  %v1776_v3 = vadd.f32 %v1742_v5, %v1673_v2  ;;  %v1366_v11 = vmul.f32 %v1333_v63, %v5739_v38  ;;  %v1797_v25 = vmul.f32 %v5744_v31, %v4334_v32  ;;  %v5746_v60 = vld [vmem:[#allocation22_spill] sm:$0xff]  ;;  %v5748_v5 = vld [vmem:[#allocation20_spill] sm:$0xff] }
 0x1f4   : > { %v4822_v50 = vmin.f32 %v1879_v41, 6.0  ;;  %v4824_v56 = vmin.f32 %v1880_v39, 6.0  ;;  %v1810_v27 = vadd.f32 %v5740_v20, %v1774_v14  ;;  %v1811_v58 = vadd.f32 %v5741_v33, %v1775_v57  ;;  %v5749_v41 = vld [vmem:[#allocation40_spill] sm:$0xff]  ;;  %v5751_v57 = vld [vmem:[#allocation45_spill] sm:$0xff]  ;;  %v5753_v20 = vld [vmem:[#allocation23_spill] sm:$0xff] }
 0x1f5   : > { %v4830_v52 = vmin.f32 %v1881_v19, 6.0  ;;  %v1812_v16 = vadd.f32 %v5742_v13, %v1776_v3  ;;  %v4834_v29 = vmul.f32 %v4547_v34, %v1366_v11  ;;  %v749_v59 = vmul.f32 %v5747_v49, %v5746_v60  ;;  %v5750_v14 = vld [vmem:[#allocation32_spill] sm:$0xff] }
 0x1f6   : > { %v1846_v15 = vadd.f32 %v5743_v62, %v1810_v27  ;;  %v1847_v9 = vadd.f32 %v1831_v44, %v1811_v58  ;;  %1946 = vperm.xlu1 %3065, %v4822_v50   ;;  %1951 = vperm.xlu2 %3064, %v4824_v56   ;;  %v648_v39 = vmul.f32 %v5749_v41, %v5748_v5  ;;  %v5752_v38 = vld [vmem:[#allocation44_spill] sm:$0xff]  ;;  %v1487_v5 = vstv %s1486_s6 }
 0x1f7   : > { %v1848_v36 = vadd.f32 %v1832_v51, %v1812_v16  ;;  %v1743_v55 = vrot.slane %v4834_v29, 1  ;;  %1956 = vperm.xlu0 %3063, %v4830_v52   ;;  %v870_v44 = vmul.f32 %v5751_v57, %v5750_v14  ;;  %v647_v11 = vmul.f32 %v5749_v41, %v5752_v38  ;;  %v5754_v27 = vld [vmem:[#allocation48_spill] sm:$0xff]  ;;  %v5756_v16 = vld [vmem:[#allocation21_spill] sm:$0xff] }
 0x1f8   : > { %v1866_v21 = vadd.f32 %v4645_v17, %v1846_v15  ;;  %v1867_v12 = vadd.f32 %v4645_v17, %v1847_v9  ;;  %v769_v3 = vadd.f32 %v749_v59, %v648_v39  ;;  %v991_v33 = vmul.f32 %v5754_v27, %v5753_v20  ;;  %v4889_v51 = vld [vmem:[%s5755_s4] sm:$0xff]  ;;  %s5766_s4 = sld [smem:[#allocation71_spill]] }
 0x1f9   : > { %v1868_v53 = vadd.f32 %v4645_v17, %v1848_v36  ;;  %v1744_v7 = vsel %vm1156_vm1, %v1741_v45, %v1743_v55  ;;  %v5745_v45 = vmov 1   ;;  %v869_v62 = vmul.f32 %v5751_v57, %v5756_v16  ;;  %v5757_v36 = vld [vmem:[#allocation29_spill] sm:$0xff] }
 0x1fa   : > { %v1882_v42 = vmax.f32 %v1866_v21, 0.0  ;;  %v1883_v24 = vmax.f32 %v1867_v12, 0.0  ;;  %v1777_v47 = vadd.f32 %v1744_v7, %v4589_v43  ;;  %v3095_v43 = vld [vmem:[%s3552_s7 + $0x90] sm:$0xff]  ;;  %v890_v15 = vadd.f32 %v870_v44, %v769_v3 }
 0x1fb   : > { %v1884_v8 = vmax.f32 %v1868_v53, 0.0  ;;  %v990_v21 = vmul.f32 %v5754_v27, %v5757_v36  ;;  %v4899_v53 = vperm.slane %v4889_v51, 0  ;;  %vm4911_vm3 = vcmp.eq.s32.totalorder %v1487_v5, 1 }
 0x1fc   : > { %v4850_v18 = vmin.f32 %v1882_v42, 6.0  ;;  %v4852_v48 = vmin.f32 %v1883_v24, 6.0  ;;  %v1813_v46 = vadd.f32 %v1797_v25, %v1777_v47  ;;  %v1011_v12 = vadd.f32 %v991_v33, %v890_v15 }
 0x1fd   : > { %v4854_v0 = vmin.f32 %v1884_v8, 6.0  ;;  %v4902_v42 = vperm.slane %v4889_v51, 1  ;;  %v3096_v8 = vld [vmem:[%s5536_s2] ss:$0 sm:$0xff] }
 0x1fe   : > { %1961 = vperm.xlu1 %3065, %v4850_v18   ;;  %1966 = vperm.xlu2 %3064, %v4852_v48   ;;  %s2764_s6 = scalar_lea.hbm %s5766_s4, %s2911_s14  ;;  %s3207_s20 = scalar_lea.hbm %s5766_s4, 512 }
 0x1ff   : > { %1971 = vperm.xlu0 %3063, %v4854_v0   ;;  %s2767_s22 = sshll.u32 %s2764_s6, 4  ;;  %s2768_s22 = int_to_ptr.hbm [resolvable:$true] %s2767_s22 }
 0x207   : > { %3066 = vset.pattern.permute.xlu0 %v5745_v45 }
 0x208   : > { %722 = vperm.xlu0 %3066, %v3095_v43   ;;  %v1035_v43 = vadd.f32 %v3096_v8, %v1011_v12 }
 0x20a   : > { %v1055_v57 = vmax.f32 %v1035_v43, 0.0 }
 0x20c   : > { %v1075_v27 = vmin.f32 %v1055_v57, 6.0 }
 0x210   : > { %2002 = vperm.xlu0 %3066, %v4693_v61  }
 0x218   : > { %2022 = vperm.xlu0 %3066, %v4784_v40  }
 0x220   : > { %2034 = vperm.xlu0 %3066, %v4822_v50  }
 0x228   : > { %2046 = vperm.xlu0 %3066, %v4850_v18  }
 0x236   : > { %v1907_v24 = vpop.permute.xlu2 %1906 }
 0x237   : > { %v1985_v60 = vmul.f32 %v4899_v53, %v1907_v24 }
 0x24e   : > { %v4865_v32 = vpop.permute.xlu0 %1911 }
 0x256   : > { %v4891_v13 = vpop.permute.xlu1 %1916 }
 0x257   : > { %v4867_v2 = vpop.permute.xlu0 %1926 }
 0x260   : > { %v1932_v14 = vpop.permute.xlu1 %1931 }
 0x261   : > { %v4869_v54 = vpop.permute.xlu0 %1941  ;;  %v1990_v33 = vmul.f32 %v4899_v53, %v1932_v14 }
 0x268   : > { %v1947_v12 = vpop.permute.xlu1 %1946 }
 0x269   : > { %v4871_v6 = vpop.permute.xlu0 %1956  ;;  %v1993_v43 = vmul.f32 %v4899_v53, %v1947_v12  ;;  %v1986_v12 = vmul.f32 %v4899_v53, %v4865_v32 }
 0x271   : > { %v4873_v63 = vpop.permute.xlu0 %1971 }
 0x27a   : > { %v723_v19 = vpop.permute.xlu0 %722 }
 0x27b   : > { %v748_v58 = vmul.f32 %v5747_v49, %v723_v19 }
 0x27d   : > { %v768_v9 = vadd.f32 %v748_v58, %v647_v11 }
 0x27f   : > { %v889_v7 = vadd.f32 %v869_v62, %v768_v9 }
 0x281   : > { %v1010_v47 = vadd.f32 %v990_v21, %v889_v7  ;;  %v1798_v21 = vmul.f32 %v5744_v31, %v4372_v22 }
 0x282   : > { %v2003_v25 = vpop.permute.xlu0 %2002 }
 0x283   : > { %v1034_v49 = vadd.f32 %v3096_v8, %v1010_v47  ;;  %v2066_v59 = vmul.f32 %v4902_v42, %v2003_v25 }
 0x285   : > { %v1054_v41 = vmax.f32 %v1034_v49, 0.0  ;;  %v4909_v39 = vadd.f32 %v2066_v59, %v1985_v60 }
 0x287   : > { %v1074_v44 = vmin.f32 %v1054_v41, 6.0  ;;  %v3323_v41 = vmov 4  }
 0x289   : > { %v1367_v3 = vmul.f32 %v1332_v23, %v1074_v44  ;;  %v1551_v38 = vsel %vm4911_vm3, 0.0, %v1074_v44  ;;  %v1552_v23 = vsel %vm4911_vm3, 0.0, %v1075_v27  ;;  %v5000_v44 = vpop.permute.xlu1 %1961 }
 0x28a   : > { %v1833_v11 = vmul.f32 %v5738_v28, %v1551_v38  ;;  %v2023_v20 = vpop.permute.xlu0 %2022  ;;  %v1987_v38 = vmul.f32 %v4899_v53, %v4891_v13  ;;  %v1989_v13 = vmul.f32 %v4899_v53, %v4867_v2 }
 0x28b   : > { %v1696_v58 = vmul.f32 %v4547_v34, %v1367_v3  ;;  %v2071_v16 = vmul.f32 %v4902_v42, %v2023_v20  ;;  %v5760_v34 = vld [vmem:[#allocation54_spill] sm:$0xff] }
 0x28c   : > { %v1849_v62 = vadd.f32 %v1833_v11, %v1813_v46  ;;  %v1834_v46 = vmul.f32 %v5738_v28, %v1552_v23  ;;  %v5761_v28 = vmov 2  }
 0x28d   : > { %v1745_v15 = vrot.slane %v1696_v58, 1  ;;  %v4923_v9 = vadd.f32 %v2071_v16, %v1990_v33 }
 0x28e   : > { %v1869_v30 = vadd.f32 %v4645_v17, %v1849_v62 }
 0x28f   : > { %v1746_v36 = vsel %vm1156_vm1, %v1743_v55, %v1745_v15 }
 0x290   : > { %v1778_v7 = vadd.f32 %v1746_v36, %v5760_v34  ;;  %v1885_v24 = vmax.f32 %v1869_v30, 0.0  ;;  %v5026_v36 = vperm.slane %v4889_v51, 2 }
 0x292   : > { %v1814_v47 = vadd.f32 %v1798_v21, %v1778_v7  ;;  %v4935_v25 = vmin.f32 %v1885_v24, 6.0  ;;  %v2035_v8 = vpop.permute.xlu0 %2034  ;;  %v3324_v7 = vmov 5   ;;  %v1992_v24 = vmul.f32 %v4899_v53, %v4869_v54 }
 0x293   : > { %v2074_v60 = vmul.f32 %v4902_v42, %v2035_v8 }
 0x294   : > { %v1850_v29 = vadd.f32 %v1834_v46, %v1814_v47  ;;  %2058 = vperm.xlu0 %3066, %v4935_v25   ;;  %1976 = vperm.xlu1 %3065, %v4935_v25  }
 0x295   : > { %v4941_v22 = vadd.f32 %v2074_v60, %v1993_v43 }
 0x296   : > { %v1870_v55 = vadd.f32 %v4645_v17, %v1850_v29  ;;  %v5762_v17 = vmov 3  }
 0x298   : > { %v1886_v31 = vmax.f32 %v1870_v55, 0.0 }
 0x29a   : > { %v4944_v49 = vmin.f32 %v1886_v31, 6.0  ;;  %v5002_v19 = vpop.permute.xlu0 %2046 }
 0x29c   : > { %3070 = vset.pattern.permute.xlu0 %v5761_v28  ;;  %3067 = vset.pattern.permute.xlu1 %v5745_v45 }
 0x29d   : > { %1981 = vperm.xlu2 %3064, %v4944_v49   ;;  %2103 = vperm.xlu0 %3070, %v4695_v1  }
 0x29e   : > { %2006 = vperm.xlu1 %3067, %v4695_v1  }
 0x2a5   : > { %3068 = vset.pattern.permute.xlu2 %v5745_v45  ;;  %2123 = vperm.xlu0 %3070, %v4786_v37   ;;  %v4973_v45 = vpop.permute.xlu2 %1921 }
 0x2a6   : > { %2014 = vperm.xlu1 %3067, %v4737_v10   ;;  %2010 = vperm.xlu2 %3068, %v4735_v4   ;;  %v1988_v54 = vmul.f32 %v4899_v53, %v4973_v45 }
 0x2ad   : > { %2135 = vperm.xlu0 %3070, %v4824_v56   ;;  %v4978_v59 = vpop.permute.xlu2 %1936 }
 0x2ae   : > { %2026 = vperm.xlu1 %3067, %v4786_v37   ;;  %2018 = vperm.xlu2 %3068, %v4741_v26   ;;  %v1991_v45 = vmul.f32 %v4899_v53, %v4978_v59 }
 0x2b5   : > { %2147 = vperm.xlu0 %3070, %v4852_v48   ;;  %v4983_v5 = vpop.permute.xlu2 %1951 }
 0x2b6   : > { %2038 = vperm.xlu1 %3067, %v4824_v56   ;;  %2030 = vperm.xlu2 %3068, %v4790_v35  }
 0x2bd   : > { %2159 = vperm.xlu0 %3070, %v4944_v49   ;;  %v4989_v14 = vpop.permute.xlu2 %1966 }
 0x2be   : > { %2050 = vperm.xlu1 %3067, %v4852_v48   ;;  %2042 = vperm.xlu2 %3068, %v4830_v52  }
 0x2c5   : > { %3074 = vset.pattern.permute.xlu0 %v5762_v17 }
 0x2c6   : > { %2062 = vperm.xlu1 %3067, %v4944_v49   ;;  %2054 = vperm.xlu2 %3068, %v4854_v0  }
 0x2c7   : > { %2204 = vperm.xlu0 %3074, %v4735_v4  }
 0x2ce   : > { %3071 = vset.pattern.permute.xlu1 %v5761_v28  ;;  %3069 = vset.pattern.permute.xlu2 %v5761_v28  ;;  %v1995_v28 = vmul.f32 %v4899_v53, %v4871_v6  ;;  %v1998_v6 = vmul.f32 %v4899_v53, %v4873_v63  ;;  %v1994_v63 = vmul.f32 %v4899_v53, %v4983_v5 }
 0x2cf   : > { %2224 = vperm.xlu0 %3074, %v4790_v35   ;;  %2107 = vperm.xlu1 %3071, %v4735_v4  }
 0x2d0   : > { %2099 = vperm.xlu2 %3069, %v4693_v61  }
 0x2d7   : > { %2236 = vperm.xlu0 %3074, %v4830_v52   ;;  %2115 = vperm.xlu1 %3071, %v4741_v26  }
 0x2d8   : > { %2111 = vperm.xlu2 %3069, %v4737_v10  }
 0x2df   : > { %2248 = vperm.xlu0 %3074, %v4854_v0   ;;  %2127 = vperm.xlu1 %3071, %v4790_v35  }
 0x2e0   : > { %2119 = vperm.xlu2 %3069, %v4784_v40  }
 0x2e7   : > { %3075 = vset.pattern.permute.xlu0 %v3323_v41  ;;  %2139 = vperm.xlu1 %3071, %v4830_v52  }
 0x2e8   : > { %2131 = vperm.xlu2 %3069, %v4822_v50   ;;  %2293 = vperm.xlu0 %3075, %v4693_v61  }
 0x2ef   : > { %2151 = vperm.xlu1 %3071, %v4854_v0  }
 0x2f0   : > { %2143 = vperm.xlu2 %3069, %v4850_v18   ;;  %2313 = vperm.xlu0 %3075, %v4784_v40  }
 0x2f7   : > { %3072 = vset.pattern.permute.xlu1 %v5762_v17  ;;  %v4995_v57 = vpop.permute.xlu2 %1981 }
 0x2f8   : > { %2155 = vperm.xlu2 %3069, %v4935_v25   ;;  %2325 = vperm.xlu0 %3075, %v4822_v50  }
 0x2f9   : > { %2196 = vperm.xlu1 %3072, %v4693_v61  }
 0x300   : > { %3073 = vset.pattern.permute.xlu2 %v5762_v17  ;;  %2337 = vperm.xlu0 %3075, %v4850_v18   ;;  %v2011_v3 = vpop.permute.xlu2 %2010 }
 0x301   : > { %2208 = vperm.xlu1 %3072, %v4737_v10   ;;  %2200 = vperm.xlu2 %3073, %v4695_v1   ;;  %v2068_v11 = vmul.f32 %v4902_v42, %v2011_v3 }
 0x303   : > { %v5011_v20 = vadd.f32 %v2068_v11, %v1987_v38 }
 0x306   : > { %v1977_v27 = vpop.permute.xlu1 %1976  ;;  %v2059_v33 = vpop.permute.xlu0 %2058 }
 0x307   : > { %v1999_v58 = vmul.f32 %v4899_v53, %v1977_v27  ;;  %v2080_v16 = vmul.f32 %v4902_v42, %v2059_v33 }
 0x308   : > { %2349 = vperm.xlu0 %3075, %v4935_v25   ;;  %v2019_v62 = vpop.permute.xlu2 %2018 }
 0x309   : > { %v5018_v15 = vadd.f32 %v2080_v16, %v1999_v58  ;;  %2216 = vperm.xlu1 %3072, %v4784_v40   ;;  %2212 = vperm.xlu2 %3073, %v4741_v26   ;;  %v2070_v30 = vmul.f32 %v4902_v42, %v2019_v62 }
 0x30b   : > { %v5023_v23 = vadd.f32 %v2070_v30, %v1989_v13 }
 0x30f   : > { %v2104_v21 = vpop.permute.xlu0 %2103 }
 0x310   : > { %v2007_v34 = vpop.permute.xlu1 %2006  ;;  %3079 = vset.pattern.permute.xlu0 %v3324_v7  ;;  %v2031_v2 = vpop.permute.xlu2 %2030  ;;  %v2164_v32 = vmul.f32 %v5026_v36, %v2104_v21 }
 0x311   : > { %v2067_v46 = vmul.f32 %v4902_v42, %v2007_v34  ;;  %2228 = vperm.xlu1 %3072, %v4822_v50   ;;  %2220 = vperm.xlu2 %3073, %v4786_v37   ;;  %v2073_v47 = vmul.f32 %v4902_v42, %v2031_v2 }
 0x312   : > { %2394 = vperm.xlu0 %3079, %v4695_v1  }
 0x313   : > { %v2083_v8 = vadd.f32 %v2067_v46, %v1986_v12  ;;  %v5039_v43 = vadd.f32 %v2073_v47, %v1992_v24 }
 0x315   : > { %v5041_v60 = vadd.f32 %v2164_v32, %v2083_v8 }
 0x317   : > { %v2124_v29 = vpop.permute.xlu0 %2123 }
 0x318   : > { %v2015_v55 = vpop.permute.xlu1 %2014  ;;  %v2043_v31 = vpop.permute.xlu2 %2042  ;;  %v2169_v13 = vmul.f32 %v5026_v36, %v2124_v29 }
 0x319   : > { %v2069_v17 = vmul.f32 %v4902_v42, %v2015_v55  ;;  %2240 = vperm.xlu1 %3072, %v4850_v18   ;;  %2232 = vperm.xlu2 %3073, %v4824_v56   ;;  %v2076_v3 = vmul.f32 %v4902_v42, %v2043_v31 }
 0x31a   : > { %2414 = vperm.xlu0 %3079, %v4786_v37  }
 0x31b   : > { %v2085_v38 = vadd.f32 %v2069_v17, %v1988_v54  ;;  %v5052_v11 = vadd.f32 %v2076_v3, %v1995_v28  ;;  %v1997_v54 = vmul.f32 %v4899_v53, %v4989_v14 }
 0x31f   : > { %v2136_v62 = vpop.permute.xlu0 %2135 }
 0x320   : > { %v2027_v27 = vpop.permute.xlu1 %2026  ;;  %v2055_v33 = vpop.permute.xlu2 %2054  ;;  %v2172_v24 = vmul.f32 %v5026_v36, %v2136_v62 }
 0x321   : > { %v2072_v58 = vmul.f32 %v4902_v42, %v2027_v27  ;;  %2252 = vperm.xlu1 %3072, %v4935_v25   ;;  %2244 = vperm.xlu2 %3073, %v4852_v48   ;;  %v2079_v16 = vmul.f32 %v4902_v42, %v2055_v33 }
 0x322   : > { %2426 = vperm.xlu0 %3079, %v4824_v56  }
 0x323   : > { %v2088_v30 = vadd.f32 %v2072_v58, %v1991_v45  ;;  %v5064_v59 = vadd.f32 %v2079_v16, %v1998_v6  ;;  %v3325_v6 = vmov 6  }
 0x325   : > { %v5066_v21 = vadd.f32 %v2169_v13, %v2088_v30  ;;  %v5110_v30 = vperm.slane %v4889_v51, 3 }
 0x327   : > { %v2148_v8 = vpop.permute.xlu0 %2147 }
 0x328   : > { %v2039_v12 = vpop.permute.xlu1 %2038  ;;  %v2175_v28 = vmul.f32 %v5026_v36, %v2148_v8 }
 0x329   : > { %v2075_v34 = vmul.f32 %v4902_v42, %v2039_v12  ;;  %3076 = vset.pattern.permute.xlu1 %v3323_v41  ;;  %2256 = vperm.xlu2 %3073, %v4944_v49  }
 0x32a   : > { %2438 = vperm.xlu0 %3079, %v4852_v48   ;;  %2297 = vperm.xlu1 %3076, %v4695_v1   ;;  %v2100_v2 = vpop.permute.xlu2 %2099 }
 0x32b   : > { %v2091_v46 = vadd.f32 %v2075_v34, %v1994_v63  ;;  %v2163_v47 = vmul.f32 %v5026_v36, %v2100_v2 }
 0x32d   : > { %v5078_v32 = vadd.f32 %v2163_v47, %v4909_v39  ;;  %v5080_v5 = vadd.f32 %v2172_v24, %v2091_v46 }
 0x32f   : > { %v2160_v14 = vpop.permute.xlu0 %2159 }
 0x330   : > { %v2051_v29 = vpop.permute.xlu1 %2050  ;;  %v2178_v16 = vmul.f32 %v5026_v36, %v2160_v14 }
 0x331   : > { %v2078_v55 = vmul.f32 %v4902_v42, %v2051_v29  ;;  %3077 = vset.pattern.permute.xlu2 %v3323_v41  ;;  %v2000_v41 = vmul.f32 %v4899_v53, %v4995_v57 }
 0x332   : > { %2450 = vperm.xlu0 %3079, %v4944_v49   ;;  %2305 = vperm.xlu1 %3076, %v4737_v10   ;;  %v2112_v31 = vpop.permute.xlu2 %2111 }
 0x333   : > { %v2094_v17 = vadd.f32 %v2078_v55, %v1997_v54  ;;  %2301 = vperm.xlu2 %3077, %v4735_v4   ;;  %v2166_v39 = vmul.f32 %v5026_v36, %v2112_v31 }
 0x335   : > { %v5091_v3 = vadd.f32 %v2166_v39, %v2085_v38  ;;  %v5093_v45 = vadd.f32 %v2175_v28, %v2094_v17 }
 0x338   : > { %v2063_v27 = vpop.permute.xlu1 %2062 }
 0x339   : > { %v2081_v33 = vmul.f32 %v4902_v42, %v2063_v27  ;;  %v2205_v12 = vpop.permute.xlu0 %2204 }
 0x33a   : > { %3083 = vset.pattern.permute.xlu0 %v3325_v6  ;;  %2317 = vperm.xlu1 %3076, %v4786_v37   ;;  %v2120_v58 = vpop.permute.xlu2 %2119 }
 0x33b   : > { %v2097_v62 = vadd.f32 %v2081_v33, %v2000_v41  ;;  %2309 = vperm.xlu2 %3077, %v4741_v26   ;;  %v2168_v38 = vmul.f32 %v5026_v36, %v2120_v58  ;;  %2495 = vperm.xlu0 %3083, %v4735_v4  }
 0x33d   : > { %v5105_v13 = vadd.f32 %v2168_v38, %v4923_v9  ;;  %v5107_v57 = vadd.f32 %v2178_v16, %v2097_v62  ;;  %v2262_v9 = vmul.f32 %v5110_v30, %v2205_v12  ;;  %v3326_v62 = vmov 7  }
 0x341   : > { %v2108_v63 = vpop.permute.xlu1 %2107  ;;  %v2225_v54 = vpop.permute.xlu0 %2224 }
 0x342   : > { %2329 = vperm.xlu1 %3076, %v4824_v56   ;;  %v2165_v34 = vmul.f32 %v5026_v36, %v2108_v63  ;;  %v2132_v2 = vpop.permute.xlu2 %2131  ;;  %v2267_v14 = vmul.f32 %v5110_v30, %v2225_v54 }
 0x343   : > { %2321 = vperm.xlu2 %3077, %v4790_v35   ;;  %v2171_v24 = vmul.f32 %v5026_v36, %v2132_v2  ;;  %2515 = vperm.xlu0 %3083, %v4790_v35  }
 0x344   : > { %v2181_v46 = vadd.f32 %v2165_v34, %v5011_v20 }
 0x345   : > { %v5120_v47 = vadd.f32 %v2171_v24, %v4941_v22 }
 0x346   : > { %v5122_v8 = vadd.f32 %v2262_v9, %v2181_v46 }
 0x349   : > { %v2116_v29 = vpop.permute.xlu1 %2115  ;;  %v2237_v27 = vpop.permute.xlu0 %2236 }
 0x34a   : > { %2341 = vperm.xlu1 %3076, %v4852_v48   ;;  %v2167_v55 = vmul.f32 %v5026_v36, %v2116_v29  ;;  %v5126_v31 = vpop.permute.xlu2 %2143  ;;  %v2270_v12 = vmul.f32 %v5110_v30, %v2237_v27 }
 0x34b   : > { %2333 = vperm.xlu2 %3077, %v4830_v52   ;;  %2527 = vperm.xlu0 %3083, %v4830_v52  }
 0x34c   : > { %v2183_v28 = vadd.f32 %v2167_v55, %v5023_v23 }
 0x351   : > { %v2128_v20 = vpop.permute.xlu1 %2127  ;;  %v2249_v63 = vpop.permute.xlu0 %2248 }
 0x352   : > { %2353 = vperm.xlu1 %3076, %v4944_v49   ;;  %v2170_v22 = vmul.f32 %v5026_v36, %v2128_v20  ;;  %v2156_v17 = vpop.permute.xlu2 %2155  ;;  %v5170_v20 = vperm.slane %v4889_v51, 4 }
 0x353   : > { %2345 = vperm.xlu2 %3077, %v4854_v0   ;;  %v2177_v39 = vmul.f32 %v5026_v36, %v2156_v17  ;;  %2539 = vperm.xlu0 %3083, %v4854_v0  }
 0x354   : > { %v2186_v41 = vadd.f32 %v2170_v22, %v5039_v43 }
 0x355   : > { %v5139_v33 = vadd.f32 %v2177_v39, %v5018_v15 }
 0x356   : > { %v5141_v23 = vadd.f32 %v2267_v14, %v2186_v41 }
 0x359   : > { %v2140_v58 = vpop.permute.xlu1 %2139 }
 0x35a   : > { %3080 = vset.pattern.permute.xlu1 %v3324_v7  ;;  %v2173_v16 = vmul.f32 %v5026_v36, %v2140_v58  ;;  %v2294_v55 = vpop.permute.xlu0 %2293 }
 0x35b   : > { %3078 = vset.pattern.permute.xlu2 %v3324_v7  ;;  %3084 = vset.pattern.permute.xlu0 %v3326_v62  ;;  %v2201_v38 = vpop.permute.xlu2 %2200 }
 0x35c   : > { %v2189_v43 = vadd.f32 %v2173_v16, %v5052_v11  ;;  %2398 = vperm.xlu1 %3080, %v4735_v4   ;;  %2390 = vperm.xlu2 %3078, %v4693_v61   ;;  %v2261_v15 = vmul.f32 %v5110_v30, %v2201_v38  ;;  %v2273_v11 = vmul.f32 %v5110_v30, %v2249_v63 }
 0x35d   : > { %2584 = vperm.xlu0 %3084, %v4693_v61  }
 0x35e   : > { %v5154_v34 = vadd.f32 %v2261_v15, %v5041_v60  ;;  %v5156_v7 = vadd.f32 %v2270_v12, %v2189_v43 }
 0x361   : > { %v2152_v2 = vpop.permute.xlu1 %2151 }
 0x362   : > { %v2176_v24 = vmul.f32 %v5026_v36, %v2152_v2  ;;  %v2314_v58 = vpop.permute.xlu0 %2313 }
 0x363   : > { %v2213_v9 = vpop.permute.xlu2 %2212 }
 0x364   : > { %v2192_v46 = vadd.f32 %v2176_v24, %v5064_v59  ;;  %2406 = vperm.xlu1 %3080, %v4741_v26   ;;  %2402 = vperm.xlu2 %3078, %v4737_v10   ;;  %v2264_v29 = vmul.f32 %v5110_v30, %v2213_v9 }
 0x365   : > { %2604 = vperm.xlu0 %3084, %v4784_v40  }
 0x366   : > { %v5165_v60 = vadd.f32 %v2264_v29, %v2183_v28  ;;  %v5167_v54 = vadd.f32 %v2273_v11, %v2192_v46  ;;  %v2357_v28 = vmul.f32 %v5170_v20, %v2294_v55  ;;  %v2362_v11 = vmul.f32 %v5170_v20, %v2314_v58 }
 0x367   : > { %v2174_v58 = vmul.f32 %v5026_v36, %v5126_v31 }
 0x36a   : > { %v2326_v9 = vpop.permute.xlu0 %2325 }
 0x36b   : > { %v2197_v22 = vpop.permute.xlu1 %2196  ;;  %v2221_v17 = vpop.permute.xlu2 %2220 }
 0x36c   : > { %2418 = vperm.xlu1 %3080, %v4790_v35   ;;  %v2260_v59 = vmul.f32 %v5110_v30, %v2197_v22  ;;  %2410 = vperm.xlu2 %3078, %v4784_v40   ;;  %v2266_v39 = vmul.f32 %v5110_v30, %v2221_v17 }
 0x36d   : > { %2616 = vperm.xlu0 %3084, %v4822_v50  }
 0x36e   : > { %v2276_v14 = vadd.f32 %v2260_v59, %v5078_v32  ;;  %v5180_v27 = vadd.f32 %v2266_v39, %v5066_v21 }
 0x370   : > { %v5182_v41 = vadd.f32 %v2357_v28, %v2276_v14  ;;  %v1996_v14 = vmul.f32 %v4899_v53, %v5000_v44 }
 0x372   : > { %v2338_v28 = vpop.permute.xlu0 %2337 }
 0x373   : > { %v2209_v16 = vpop.permute.xlu1 %2208  ;;  %v2233_v38 = vpop.permute.xlu2 %2232 }
 0x374   : > { %2430 = vperm.xlu1 %3080, %v4830_v52   ;;  %v2263_v12 = vmul.f32 %v5110_v30, %v2209_v16  ;;  %2422 = vperm.xlu2 %3078, %v4822_v50   ;;  %v2269_v43 = vmul.f32 %v5110_v30, %v2233_v38 }
 0x375   : > { %2628 = vperm.xlu0 %3084, %v4850_v18  }
 0x376   : > { %v5190_v32 = vadd.f32 %v2263_v12, %v5091_v3  ;;  %v5193_v21 = vadd.f32 %v2269_v43, %v5080_v5 }
 0x37a   : > { %v2350_v31 = vpop.permute.xlu0 %2349 }
 0x37b   : > { %v2217_v15 = vpop.permute.xlu1 %2216  ;;  %v2245_v63 = vpop.permute.xlu2 %2244 }
 0x37c   : > { %2442 = vperm.xlu1 %3080, %v4854_v0   ;;  %v2265_v2 = vmul.f32 %v5110_v30, %v2217_v15  ;;  %2434 = vperm.xlu2 %3078, %v4850_v18   ;;  %v2272_v24 = vmul.f32 %v5110_v30, %v2245_v63  ;;  %v2371_v63 = vmul.f32 %v5170_v20, %v2350_v31 }
 0x37d   : > { %2640 = vperm.xlu0 %3084, %v4935_v25  }
 0x37e   : > { %v2281_v3 = vadd.f32 %v2265_v2, %v5105_v13  ;;  %v5203_v5 = vadd.f32 %v2272_v24, %v5093_v45  ;;  %v2077_v13 = vmul.f32 %v4902_v42, %v5002_v19  ;;  %v2365_v45 = vmul.f32 %v5170_v20, %v2326_v9 }
 0x380   : > { %v5205_v46 = vadd.f32 %v2362_v11, %v2281_v3  ;;  %v5248_v11 = vperm.slane %v4889_v51, 5 }
 0x383   : > { %v2229_v29 = vpop.permute.xlu1 %2228  ;;  %v2257_v55 = vpop.permute.xlu2 %2256 }
 0x384   : > { %3081 = vset.pattern.permute.xlu1 %v3325_v6  ;;  %v2268_v22 = vmul.f32 %v5110_v30, %v2229_v29  ;;  %2446 = vperm.xlu2 %3078, %v4935_v25   ;;  %v2275_v17 = vmul.f32 %v5110_v30, %v2257_v55 }
 0x385   : > { %2487 = vperm.xlu1 %3081, %v4693_v61   ;;  %v2093_v61 = vadd.f32 %v2077_v13, %v1996_v14 }
 0x386   : > { %v2284_v59 = vadd.f32 %v2268_v22, %v5120_v47  ;;  %v5217_v39 = vadd.f32 %v2275_v17, %v5107_v57  ;;  %v2368_v57 = vmul.f32 %v5170_v20, %v2338_v28 }
 0x387   : > { %v2190_v12 = vadd.f32 %v2174_v58, %v2093_v61 }
 0x388   : > { %v5223_v16 = vadd.f32 %v2365_v45, %v2284_v59 }
 0x38b   : > { %v2241_v38 = vpop.permute.xlu1 %2240 }
 0x38c   : > { %v2271_v42 = vmul.f32 %v5110_v30, %v2241_v38  ;;  %3082 = vset.pattern.permute.xlu2 %v3325_v6 }
 0x38d   : > { %2499 = vperm.xlu1 %3081, %v4737_v10   ;;  %2491 = vperm.xlu2 %3082, %v4695_v1   ;;  %v2302_v19 = vpop.permute.xlu2 %2301 }
 0x38e   : > { %v2287_v53 = vadd.f32 %v2271_v42, %v2190_v12  ;;  %v2359_v44 = vmul.f32 %v5170_v20, %v2302_v19 }
 0x390   : > { %v5232_v36 = vadd.f32 %v2359_v44, %v5122_v8  ;;  %v5234_v47 = vadd.f32 %v2368_v57, %v2287_v53 }
 0x393   : > { %v2253_v43 = vpop.permute.xlu1 %2252 }
 0x394   : > { %v2274_v15 = vmul.f32 %v5110_v30, %v2253_v43  ;;  %v2395_v30 = vpop.permute.xlu0 %2394 }
 0x395   : > { %2507 = vperm.xlu1 %3081, %v4784_v40   ;;  %2503 = vperm.xlu2 %3082, %v4741_v26   ;;  %v2310_v6 = vpop.permute.xlu2 %2309  ;;  %v2455_v55 = vmul.f32 %v5248_v11, %v2395_v30 }
 0x396   : > { %v2290_v2 = vadd.f32 %v2274_v15, %v5139_v33  ;;  %v2361_v24 = vmul.f32 %v5170_v20, %v2310_v6 }
 0x398   : > { %v5243_v8 = vadd.f32 %v2361_v24, %v5165_v60  ;;  %v5245_v9 = vadd.f32 %v2371_v63, %v2290_v2 }
 0x39c   : > { %v2298_v3 = vpop.permute.xlu1 %2297  ;;  %v2415_v45 = vpop.permute.xlu0 %2414 }
 0x39d   : > { %2519 = vperm.xlu1 %3081, %v4822_v50   ;;  %v2358_v40 = vmul.f32 %v5170_v20, %v2298_v3  ;;  %2511 = vperm.xlu2 %3082, %v4786_v37   ;;  %v2322_v29 = vpop.permute.xlu2 %2321  ;;  %v2460_v38 = vmul.f32 %v5248_v11, %v2415_v45 }
 0x39e   : > { %v2364_v33 = vmul.f32 %v5170_v20, %v2322_v29 }
 0x39f   : > { %v2374_v60 = vadd.f32 %v2358_v40, %v5154_v34 }
 0x3a0   : > { %v5257_v22 = vadd.f32 %v2364_v33, %v5141_v23 }
 0x3a1   : > { %v5259_v17 = vadd.f32 %v2455_v55, %v2374_v60 }
 0x3a4   : > { %v2306_v13 = vpop.permute.xlu1 %2305  ;;  %v2427_v12 = vpop.permute.xlu0 %2426 }
 0x3a5   : > { %2531 = vperm.xlu1 %3081, %v4850_v18   ;;  %v2360_v50 = vmul.f32 %v5170_v20, %v2306_v13  ;;  %2523 = vperm.xlu2 %3082, %v4824_v56   ;;  %v2334_v59 = vpop.permute.xlu2 %2333  ;;  %v2463_v53 = vmul.f32 %v5248_v11, %v2427_v12 }
 0x3a6   : > { %v2367_v28 = vmul.f32 %v5170_v20, %v2334_v59 }
 0x3a7   : > { %v2376_v14 = vadd.f32 %v2360_v50, %v5190_v32 }
 0x3a8   : > { %v5267_v34 = vadd.f32 %v2367_v28, %v5156_v7 }
 0x3ac   : > { %v2318_v23 = vpop.permute.xlu1 %2317 }
 0x3ad   : > { %2543 = vperm.xlu1 %3081, %v4935_v25   ;;  %v2363_v58 = vmul.f32 %v5170_v20, %v2318_v23  ;;  %2535 = vperm.xlu2 %3082, %v4852_v48   ;;  %v2346_v18 = vpop.permute.xlu2 %2345 }
 0x3ae   : > { %v2370_v61 = vmul.f32 %v5170_v20, %v2346_v18 }
 0x3af   : > { %v2379_v42 = vadd.f32 %v2363_v58, %v5180_v27  ;;  %v2439_v27 = vpop.permute.xlu0 %2438 }
 0x3b0   : > { %v5276_v32 = vadd.f32 %v2370_v61, %v5167_v54 }
 0x3b1   : > { %v5278_v7 = vadd.f32 %v2460_v38, %v2379_v42 }
 0x3b4   : > { %v2330_v19 = vpop.permute.xlu1 %2329 }
 0x3b5   : > { %3085 = vset.pattern.permute.xlu1 %v3326_v62  ;;  %v2366_v25 = vmul.f32 %v5170_v20, %v2330_v19  ;;  %2547 = vperm.xlu2 %3082, %v4944_v49  }
 0x3b6   : > { %2588 = vperm.xlu1 %3085, %v4695_v1   ;;  %v2391_v57 = vpop.permute.xlu2 %2390  ;;  %v2466_v1 = vmul.f32 %v5248_v11, %v2439_v27 }
 0x3b7   : > { %v2382_v44 = vadd.f32 %v2366_v25, %v5193_v21  ;;  %v2451_v24 = vpop.permute.xlu0 %2450  ;;  %v2454_v19 = vmul.f32 %v5248_v11, %v2391_v57 }
 0x3b9   : > { %v5286_v31 = vadd.f32 %v2463_v53, %v2382_v44  ;;  %v2470_v27 = vadd.f32 %v2454_v19, %v5182_v41 }
 0x3bc   : > { %v2342_v54 = vpop.permute.xlu1 %2341 }
 0x3bd   : > { %v2369_v43 = vmul.f32 %v5170_v20, %v2342_v54  ;;  %3086 = vset.pattern.permute.xlu2 %v3326_v62 }
 0x3be   : > { %2596 = vperm.xlu1 %3085, %v4737_v10   ;;  %2592 = vperm.xlu2 %3086, %v4735_v4   ;;  %v2403_v15 = vpop.permute.xlu2 %2402  ;;  %v2469_v10 = vmul.f32 %v5248_v11, %v2451_v24 }
 0x3bf   : > { %v2385_v6 = vadd.f32 %v2369_v43, %v5203_v5  ;;  %v2457_v63 = vmul.f32 %v5248_v11, %v2403_v15  ;;  %v5306_v40 = vpop.permute.xlu0 %2495  ;;  %v2892_v15 = vld [vmem:[%s3552_s7 + $0x10] sm:$0xff] }
 0x3c1   : > { %v5295_v21 = vadd.f32 %v2457_v63, %v2376_v14  ;;  %v5297_v2 = vadd.f32 %v2466_v1, %v2385_v6 }
 0x3c4   : > { %v2354_v30 = vpop.permute.xlu1 %2353 }
 0x3c5   : > { %v2372_v3 = vmul.f32 %v5170_v20, %v2354_v30 }
 0x3c6   : > { %2608 = vperm.xlu1 %3085, %v4786_v37   ;;  %2600 = vperm.xlu2 %3086, %v4741_v26   ;;  %v2411_v4 = vpop.permute.xlu2 %2410 }
 0x3c7   : > { %v2388_v62 = vadd.f32 %v2372_v3, %v5217_v39  ;;  %v2516_v60 = vpop.permute.xlu0 %2515  ;;  %v2459_v30 = vmul.f32 %v5248_v11, %v2411_v4 }
 0x3c9   : > { %v5304_v5 = vadd.f32 %v2469_v10, %v2388_v62  ;;  %v2475_v62 = vadd.f32 %v2459_v30, %v5205_v46 }
 0x3ce   : > { %2620 = vperm.xlu1 %3085, %v4824_v56   ;;  %v2399_v29 = vpop.permute.xlu1 %2398  ;;  %2612 = vperm.xlu2 %3086, %v4790_v35   ;;  %v2423_v33 = vpop.permute.xlu2 %2422 }
 0x3cf   : > { %v2456_v20 = vmul.f32 %v5248_v11, %v2399_v29  ;;  %v2528_v50 = vpop.permute.xlu0 %2527 }
 0x3d1   : > { %v5312_v37 = vadd.f32 %v2456_v20, %v5232_v36 }
 0x3d6   : > { %2632 = vperm.xlu1 %3085, %v4852_v48   ;;  %v2407_v26 = vpop.permute.xlu1 %2406  ;;  %2624 = vperm.xlu2 %3086, %v4830_v52   ;;  %v5316_v39 = vpop.permute.xlu2 %2434  ;;  %v5327_v48 = vperm.slane %v4889_v51, 6 }
 0x3d7   : > { %v2458_v55 = vmul.f32 %v5248_v11, %v2407_v26  ;;  %v2540_v58 = vpop.permute.xlu0 %2539 }
 0x3d8   : > { %v2558_v13 = vmul.f32 %v5327_v48, %v2516_v60  ;;  %v2564_v38 = vmul.f32 %v5327_v48, %v2540_v58  ;;  %v2462_v60 = vmul.f32 %v5248_v11, %v2423_v33  ;;  %v2465_v33 = vmul.f32 %v5248_v11, %v5316_v39 }
 0x3d9   : > { %v5320_v56 = vadd.f32 %v2458_v55, %v5243_v8 }
 0x3de   : > { %2644 = vperm.xlu1 %3085, %v4944_v49   ;;  %v2419_v35 = vpop.permute.xlu1 %2418  ;;  %2636 = vperm.xlu2 %3086, %v4854_v0   ;;  %v5324_v36 = vpop.permute.xlu2 %2446  ;;  %v2561_v0 = vmul.f32 %v5327_v48, %v2528_v50  ;;  %v2478_v50 = vadd.f32 %v2462_v60, %v5223_v16  ;;  %v2553_v16 = vmul.f32 %v5327_v48, %v5306_v40 }
 0x3df   : > { %v2461_v52 = vmul.f32 %v5248_v11, %v2419_v35  ;;  %v2585_v25 = vpop.permute.xlu0 %2584  ;;  %v2468_v40 = vmul.f32 %v5248_v11, %v5324_v36 }
 0x3e1   : > { %v2477_v45 = vadd.f32 %v2461_v52, %v5257_v22  ;;  %v2897_v52 = vld [vmem:[%s3552_s7 + $0x38] sm:$0xff] }
 0x3e3   : > { %v5332_v59 = vadd.f32 %v2558_v13, %v2477_v45 }
 0x3e6   : > { %v2431_v8 = vpop.permute.xlu1 %2430 }
 0x3e7   : > { %v2464_v49 = vmul.f32 %v5248_v11, %v2431_v8  ;;  %v5335_v28 = vpop.permute.xlu2 %2491  ;;  %v2605_v24 = vpop.permute.xlu0 %2604 }
 0x3e9   : > { %v2480_v14 = vadd.f32 %v2464_v49, %v5267_v34  ;;  %v5350_v34 = vperm.slane %v4889_v51, 7 }
 0x3eb   : > { %v5339_v23 = vadd.f32 %v2561_v0, %v2480_v14  ;;  %v2648_v43 = vmul.f32 %v5350_v34, %v2585_v25  ;;  %v2653_v20 = vmul.f32 %v5350_v34, %v2605_v24 }
 0x3ee   : > { %v2443_v18 = vpop.permute.xlu1 %2442 }
 0x3ef   : > { %v2467_v61 = vmul.f32 %v5248_v11, %v2443_v18  ;;  %v5342_v22 = vpop.permute.xlu2 %2503  ;;  %v2617_v55 = vpop.permute.xlu0 %2616  ;;  %v2900_v18 = vld [vmem:[%s3552_s7 + $0x50] sm:$0xff] }
 0x3f0   : > { %v2656_v49 = vmul.f32 %v5350_v34, %v2617_v55 }
 0x3f1   : > { %v2483_v12 = vadd.f32 %v2467_v61, %v5276_v32  ;;  %v5361_v32 = vld [vmem:[%s5764_s15] ss:$0 sm:$0xff]  ;;  %s3201_s15 = sshra.s32 %s2768_s22, 4  ;;  %s3202_s15 = int_to_ptr.hbm [resolvable:$true] %s3201_s15 }
 0x3f2   : > { %s3203_s21 = scalar_lea.hbm %s3202_s15, 128  ;;  %p3208_p2 = scmp.lt.s32.totalorder %s3202_s15, %s5766_s4 }
 0x3f3   : > { %v5346_v42 = vadd.f32 %v2564_v38, %v2483_v12  ;;  %v2481_v12 = vadd.f32 %v2465_v33, %v5234_v47  ;;  %v2555_v47 = vmul.f32 %v5327_v48, %v5342_v22  ;;  %p3204_p13 = scmp.ne.s32.totalorder %s3202_s15, %s3203_s21  ;;  %p3209_p5 = scmp.lt.s32.totalorder %s3207_s20, %s3203_s21 }
 0x3f5   : > { %p3205_p0 = pnand %p3204_p13, %p3478_p10  ;;  %p3210_p7 = por %p3209_p5, %p3208_p2 }
 0x3f7   : > { %v2488_v53 = vpop.permute.xlu1 %2487  ;;  %v5352_v44 = vpop.permute.xlu2 %2511  ;;  %p3206_p1 = pneg %p3205_p0 }
 0x3f8   : > { %v2551_v54 = vmul.f32 %v5327_v48, %v2488_v53  ;;  %v2629_v58 = vpop.permute.xlu0 %2628 }
 0x3f9   : > { %p3211_p8 = pnand %p3210_p7, %p3206_p1 }
 0x3fa   : > { %v2567_v57 = vadd.f32 %v2551_v54, %v2470_v27  ;;  %v2569_v27 = vadd.f32 %v2553_v16, %v5312_v37  ;;  %v2659_v54 = vmul.f32 %v5350_v34, %v2629_v58 }
 0x3fc   : > { %v2664_v51 = vadd.f32 %v2648_v43, %v2567_v57 }
 0x3fe   : > { %v2684_v1 = vadd.f32 %v5361_v32, %v2664_v51 }
 0x3ff   : > { %v5367_v6 = vpop.permute.xlu1 %2499  ;;  %v5369_v41 = vpop.permute.xlu2 %2523 }
 0x400   : > { %v2718_v63 = vadd.f32 %v2892_v15, %v2684_v1  ;;  %v2894_v15 = vld [vmem:[%s3552_s7 + $0x20] sm:$0xff]  ;;  %v2903_v1 = vld [vmem:[%s3552_s7 + $0x68] sm:$0xff]  ;;  %v2641_v24 = vpop.permute.xlu0 %2640  ;;  %v2554_v16 = vmul.f32 %v5327_v48, %v5367_v6 }
 0x402   : > { %2734 = vst [vmem:[%s5371_s19] sm:$0xff] %v2718_v63 }
 0x407   : > { %v2508_v3 = vpop.permute.xlu1 %2507  ;;  %v5375_v10 = vpop.permute.xlu2 %2535 }
 0x408   : > { %v2556_v29 = vmul.f32 %v5327_v48, %v2508_v3 }
 0x40a   : > { %v2572_v26 = vadd.f32 %v2556_v29, %v2475_v62  ;;  %v2484_v62 = vadd.f32 %v2468_v40, %v5245_v9  ;;  %v2552_v9 = vmul.f32 %v5327_v48, %v5335_v28  ;;  %v2557_v40 = vmul.f32 %v5327_v48, %v5352_v44 }
 0x40c   : > { %v2669_v35 = vadd.f32 %v2653_v20, %v2572_v26  ;;  %v2571_v20 = vadd.f32 %v2555_v47, %v5320_v56  ;;  %v2662_v26 = vmul.f32 %v5350_v34, %v2641_v24 }
 0x40e   : > { %v2689_v13 = vadd.f32 %v5361_v32, %v2669_v35 }
 0x40f   : > { %v2520_v4 = vpop.permute.xlu1 %2519  ;;  %v5383_v45 = vpop.permute.xlu2 %2547 }
 0x410   : > { %v2723_v8 = vadd.f32 %v2897_v52, %v2689_v13  ;;  %v2559_v46 = vmul.f32 %v5327_v48, %v2520_v4  ;;  %v2896_v52 = vld [vmem:[%s3552_s7 + $0x30] sm:$0xff]  ;;  %v2906_v13 = vld [vmem:[%s3552_s7 + $0x80] sm:$0xff] }
 0x412   : > { %2739 = vst [vmem:[%s5371_s19 + $0x28] sm:$0xff] %v2723_v8  ;;  %v2575_v0 = vadd.f32 %v2559_v46, %v2478_v50 }
 0x414   : > { %v2672_v14 = vadd.f32 %v2656_v49, %v2575_v0  ;;  %v2568_v0 = vadd.f32 %v2552_v9, %v5259_v17 }
 0x416   : > { %v2692_v61 = vadd.f32 %v5361_v32, %v2672_v14 }
 0x417   : > { %v2532_v38 = vpop.permute.xlu1 %2531 }
 0x418   : > { %v2726_v19 = vadd.f32 %v2900_v18, %v2692_v61  ;;  %v2562_v25 = vmul.f32 %v5327_v48, %v2532_v38  ;;  %v2593_v53 = vpop.permute.xlu2 %2592  ;;  %v2893_v18 = vld [vmem:[%s3552_s7 + $0x18] sm:$0xff]  ;;  %v2899_v61 = vld [vmem:[%s3552_s7 + $0x48] sm:$0xff] }
 0x419   : > { %v2650_v39 = vmul.f32 %v5350_v34, %v2593_v53 }
 0x41a   : > { %2742 = vst [vmem:[%s5371_s19 + $0x40] sm:$0xff] %v2726_v19  ;;  %v2578_v43 = vadd.f32 %v2562_v25, %v2481_v12 }
 0x41b   : > { %v2666_v57 = vadd.f32 %v2650_v39, %v2569_v27  ;;  %v2570_v27 = vadd.f32 %v2554_v16, %v5295_v21 }
 0x41c   : > { %v2675_v51 = vadd.f32 %v2659_v54, %v2578_v43  ;;  %v2895_v43 = vld [vmem:[%s3552_s7 + $0x28] sm:$0xff] }
 0x41d   : > { %v2686_v37 = vadd.f32 %v5361_v32, %v2666_v57  ;;  %v2902_v57 = vld [vmem:[%s3552_s7 + $0x60] sm:$0xff] }
 0x41e   : > { %v2695_v63 = vadd.f32 %v5361_v32, %v2675_v51 }
 0x41f   : > { %v2720_v30 = vadd.f32 %v2894_v15, %v2686_v37  ;;  %v2544_v3 = vpop.permute.xlu1 %2543 }
 0x420   : > { %v2729_v29 = vadd.f32 %v2903_v1, %v2695_v63  ;;  %v2565_v11 = vmul.f32 %v5327_v48, %v2544_v3  ;;  %v2601_v36 = vpop.permute.xlu2 %2600  ;;  %v2573_v63 = vadd.f32 %v2557_v40, %v5278_v7  ;;  %v2898_v3 = vld [vmem:[%s3552_s7 + $0x40] sm:$0xff] }
 0x421   : > { %2736 = vst [vmem:[%s5371_s19 + $0x10] sm:$0xff] %v2720_v30  ;;  %v2652_v22 = vmul.f32 %v5350_v34, %v2601_v36 }
 0x422   : > { %2745 = vst [vmem:[%s5371_s19 + $0x58] sm:$0xff] %v2729_v29  ;;  %v2581_v55 = vadd.f32 %v2565_v11, %v2484_v62  ;;  %v2905_v62 = vld [vmem:[%s3552_s7 + $0x78] sm:$0xff]  ;;  %v2560_v29 = vmul.f32 %v5327_v48, %v5369_v41  ;;  %v2563_v41 = vmul.f32 %v5327_v48, %v5375_v10  ;;  %v2566_v10 = vmul.f32 %v5327_v48, %v5383_v45  ;;  %v2907_v48 = vld [vmem:[%s3552_s7 + $0x88] sm:$0xff] }
 0x423   : > { %v2668_v60 = vadd.f32 %v2652_v22, %v2571_v20 }
 0x424   : > { %v2678_v35 = vadd.f32 %v2662_v26, %v2581_v55  ;;  %v2576_v26 = vadd.f32 %v2560_v29, %v5286_v31 }
 0x425   : > { %v2688_v56 = vadd.f32 %v5361_v32, %v2668_v60  ;;  %v2901_v60 = vld [vmem:[%s3552_s7 + $0x58] sm:$0xff] }
 0x426   : > { %v2698_v4 = vadd.f32 %v5361_v32, %v2678_v35 }
 0x427   : > { %v2722_v50 = vadd.f32 %v2896_v52, %v2688_v56 }
 0x428   : > { %v2732_v8 = vadd.f32 %v2906_v13, %v2698_v4  ;;  %v2589_v46 = vpop.permute.xlu1 %2588  ;;  %v2613_v49 = vpop.permute.xlu2 %2612  ;;  %v2579_v13 = vadd.f32 %v2563_v41, %v5297_v2  ;;  %v2904_v4 = vld [vmem:[%s3552_s7 + $0x70] sm:$0xff]  ;;  %v2582_v2 = vadd.f32 %v2566_v10, %v5304_v5 }
 0x429   : > { %2738 = vst [vmem:[%s5371_s19 + $0x20] sm:$0xff] %v2722_v50  ;;  %v2649_v33 = vmul.f32 %v5350_v34, %v2589_v46  ;;  %v2655_v14 = vmul.f32 %v5350_v34, %v2613_v49 }
 0x42a   : > { %2748 = vst [vmem:[%s5371_s19 + $0x70] sm:$0xff] %v2732_v8 }
 0x42b   : > { %v2665_v28 = vadd.f32 %v2649_v33, %v2568_v0  ;;  %v2671_v58 = vadd.f32 %v2655_v14, %v5332_v59 }
 0x42d   : > { %v2685_v17 = vadd.f32 %v5361_v32, %v2665_v28  ;;  %v2691_v38 = vadd.f32 %v5361_v32, %v2671_v58 }
 0x42f   : > { %v2719_v12 = vadd.f32 %v2893_v18, %v2685_v17  ;;  %v2725_v19 = vadd.f32 %v2899_v61, %v2691_v38 }
 0x430   : > { %v2597_v25 = vpop.permute.xlu1 %2596  ;;  %v2625_v53 = vpop.permute.xlu2 %2624 }
 0x431   : > { %2735 = vst [vmem:[%s5371_s19 + $0x8] sm:$0xff] %v2719_v12  ;;  %v2651_v59 = vmul.f32 %v5350_v34, %v2597_v25  ;;  %v2658_v39 = vmul.f32 %v5350_v34, %v2625_v53 }
 0x432   : > { %2741 = vst [vmem:[%s5371_s19 + $0x38] sm:$0xff] %v2725_v19 }
 0x433   : > { %v2667_v54 = vadd.f32 %v2651_v59, %v2570_v27  ;;  %v2674_v6 = vadd.f32 %v2658_v39, %v5339_v23 }
 0x435   : > { %v2687_v21 = vadd.f32 %v5361_v32, %v2667_v54  ;;  %v2694_v51 = vadd.f32 %v5361_v32, %v2674_v6 }
 0x437   : > { %v2721_v15 = vadd.f32 %v2895_v43, %v2687_v21  ;;  %v2728_v47 = vadd.f32 %v2902_v57, %v2694_v51 }
 0x438   : > { %v2609_v1 = vpop.permute.xlu1 %2608  ;;  %v2637_v37 = vpop.permute.xlu2 %2636 }
 0x439   : > { %2737 = vst [vmem:[%s5371_s19 + $0x18] sm:$0xff] %v2721_v15  ;;  %v2654_v23 = vmul.f32 %v5350_v34, %v2609_v1  ;;  %v2661_v24 = vmul.f32 %v5350_v34, %v2637_v37 }
 0x43a   : > { %2744 = vst [vmem:[%s5371_s19 + $0x50] sm:$0xff] %v2728_v47 }
 0x43b   : > { %v2670_v44 = vadd.f32 %v2654_v23, %v2573_v63  ;;  %v2677_v30 = vadd.f32 %v2661_v24, %v5346_v42 }
 0x43d   : > { %v2690_v7 = vadd.f32 %v5361_v32, %v2670_v44  ;;  %v2697_v11 = vadd.f32 %v5361_v32, %v2677_v30 }
 0x43f   : > { %v2724_v36 = vadd.f32 %v2898_v3, %v2690_v7  ;;  %v2731_v20 = vadd.f32 %v2905_v62, %v2697_v11 }
 0x440   : > { %v2621_v22 = vpop.permute.xlu1 %2620 }
 0x441   : > { %2740 = vst [vmem:[%s5371_s19 + $0x30] sm:$0xff] %v2724_v36  ;;  %v2657_v42 = vmul.f32 %v5350_v34, %v2621_v22 }
 0x442   : > { %2747 = vst [vmem:[%s5371_s19 + $0x68] sm:$0xff] %v2731_v20 }
 0x443   : > { %v2673_v55 = vadd.f32 %v2657_v42, %v2576_v26 }
 0x445   : > { %v2693_v35 = vadd.f32 %v5361_v32, %v2673_v55 }
 0x447   : > { %v2727_v52 = vadd.f32 %v2901_v60, %v2693_v35 }
 0x448   : > { %v2633_v9 = vpop.permute.xlu1 %2632 }
 0x449   : > { %2743 = vst [vmem:[%s5371_s19 + $0x48] sm:$0xff] %v2727_v52  ;;  %v2660_v31 = vmul.f32 %v5350_v34, %v2633_v9 }
 0x44b   : > { %v2676_v56 = vadd.f32 %v2660_v31, %v2579_v13 }
 0x44d   : > { %v2696_v50 = vadd.f32 %v5361_v32, %v2676_v56 }
 0x44f   : > { %v2730_v8 = vadd.f32 %v2904_v4, %v2696_v50 }
 0x450   : > { %v2645_v46 = vpop.permute.xlu1 %2644 }
 0x451   : > { %2746 = vst [vmem:[%s5371_s19 + $0x60] sm:$0xff] %v2730_v8  ;;  %v2663_v49 = vmul.f32 %v5350_v34, %v2645_v46 }
 0x453   : > { %v2679_v0 = vadd.f32 %v2663_v49, %v2582_v2 }
 0x455   : > { %v2699_v45 = vadd.f32 %v5361_v32, %v2679_v0 }
 0x457   : > { %v2733_v33 = vadd.f32 %v2907_v48, %v2699_v45 }
 0x459   : > { %2749 = vst [vmem:[%s5371_s19 + $0x78] sm:$0xff] %v2733_v33 }
 0x45a   : > { %3214 = shalt.err (!%p3211_p8)
}
 0x45b   : > { %s3327_s26 = smov 128   ;;  %s3328_s16 = smov 8  }
 0x45c   : > { %2927 = dma.vmem_to_hbm [thread:$0]  (%p3478_p10), %s2766_s13, 2048, %s2768_s22, %s2751_s23, %s3327_s26, %s3327_s26, %s3328_s16  }
 0x45d PF: > { %s5768_s19 = sld [smem:[#allocation16_spill]] }
 0x45e   : > { %s5769_s14 = sld [smem:[#allocation12_spill]] }
 0x463   : > { %p2949_p4 = scmp.ge.s32.totalorder %s5768_s19, 2 }
 0x464   : > { %s2782_s5 = sand.u32 1, %s5769_s14  }
 0x465   : > { %p2941_p9 = pnand %p2949_p4, %p3483_p12  ;;  %s2783_s6 = scalar_lea.sflag [#allocation4], %s2782_s5 }
 0x467   : > { %p2942_p11 = pneg %p2941_p9 }
 0x469   : > { %3268 = dma.done.wait (%p2942_p11), %s2783_s6, 2048  }
 0x46a   : > { %3270 = vsyncadd (%p2942_p11), %s2783_s6, 4294965248  ;;  %s30_s21 = sadd.s32 1, %s5768_s19   ;;  %s5771_s25 = sld [smem:[#allocation13_spill]] }
 0x46b   : > { %p27_p3 = scmp.ge.s32.totalorder %s30_s21, 6   ;;  %s5772_s14 = sld [smem:[#allocation15_spill]] }
 0x46c   : > { %s5773_s16 = sld [smem:[#allocation19_spill]]  ;;  %s5774_s9 = smov %s5788_s28 }
 0x46d   : > { %s5775_s26 = smov %s3281_s27  ;;  %s5776_s27 = smov %s3533_s3 }
 0x46e   : > { %s5777_s28 = smov %s3289_s29  ;;  %s5778_s29 = smov %s3293_s30 }
 0x46f   : > { %s5779_s30 = smov %s3528_s18  ;;  %s5780_s15 = smov %s3309_s17 }
 0x470   : > { %s5781_s17 = smov %s5774_s9  ;;  %s5782_s18 = smov %s30_s21 }
 0x471   :  { %29 = sbr.rel (!%p27_p3) target bundleno = 20 (0x14), region = 127 }
 0x476   :  { %2789 = vsyncpa [#allocation3], 1 }
 0x477   :  { %2791 = vsyncpa [#allocation3 + $0x1], 1 }
 0x478   :  { %2792 = vsyncpa [#allocation6], 1 }
 0x479   :  { %2793 = vsyncpa [#allocation4], 1 }
 0x47a   :  { %2795 = vsyncpa [#allocation4 + $0x1], 1 }

</bundles_post_ra>
